<compile_context>
chip_gen: v7x
topology: tpu7x:2x2x1
jax: 0.10.0
libtpu: 0.0.40
codegen_flags: <defaults>
</compile_context>

<pallas_src>
import functools

import jax
import jax.numpy as jnp
from jax.experimental import pallas as pl
from jax.experimental.pallas import tpu as pltpu


def _vmem_limit_bytes():
    """Scoped-VMEM limit: physical capacity minus headroom, clamped to [32, 112] MiB."""
    try:
        cap = int(pltpu.get_tpu_info().vmem_capacity_bytes)
        return int(min(max(cap - (16 << 20), 32 << 20), 112 << 20))
    except Exception:
        return 48 << 20          # safe on v5e/v6e/v7x


def _largest_divisor_leq(n, target):
    t = int(max(1, min(n, target)))
    while n % t:
        t -= 1
    return t


# ----------------------------------------------------------------------------
# Pass 1: conv (grouped shifted matmuls) + per-(image, row-tile) BN partials
# ----------------------------------------------------------------------------
def _conv_stats_kernel(x_ref, w_ref, y_ref, ssum_ref, ssq_ref, *,
                       k, row_stride, s_tile, wo):
    # x_ref: (Sin_pad, C)  compute dtype      w_ref: (k*k, C, OCp) compute dtype
    # y_ref: (s_tile, OCp) compute dtype      ssum/ssq: (1, OCp)   f32
    acc = None
    for dh in range(k):                      # static, fully unrolled
        row = None
        for dw in range(k):
            t = dh * k + dw
            off = dh * row_stride + dw       # dh*row_stride is sublane-aligned
            d = jnp.dot(x_ref[off:off + s_tile, :], w_ref[t],
                        preferred_element_type=jnp.float32)
            row = d if row is None else row + d
        acc = row if acc is None else acc + row

    # In-kernel validity mask for the (row_stride - wo) wrap/pad columns of each
    # Wp8-wide extended row group: a few VPU ops, no extra VMEM/HBM mask stream.
    col = jax.lax.broadcasted_iota(jnp.int32, (s_tile, 1), 0) % row_stride
    m = (col < wo).astype(jnp.float32)
    ym = acc * m
    ssum_ref[...] = jnp.sum(ym, axis=0, keepdims=True)
    ssq_ref[...] = jnp.sum(ym * acc, axis=0, keepdims=True)

    y_ref[...] = acc.astype(y_ref.dtype)     # single cast + single writeback


# ----------------------------------------------------------------------------
# Pass 2: fused BN affine (one FMA) + SiLU, wrap-column drop folded into store
# ----------------------------------------------------------------------------
def _bn_silu_kernel(y_ref, a_ref, b_ref, o_ref, *, wo):
    y = y_ref[...][:, :wo, :].astype(jnp.float32)        # (RT, Wo, OCp)
    z = y * a_ref[...] + b_ref[...]                      # broadcast (1,1,OCp)
    o_ref[...] = (z * jax.nn.sigmoid(z)).astype(o_ref.dtype)


def conv_bn_act(x, weight, gamma, beta, *, k=3, s=1, p=1, eps=1e-5,
                compute_dtype=jnp.bfloat16, row_tile=None):
    """x: (N, C, H, W); weight: (OC, C, k, k); gamma/beta: (OC,). Returns NCHW f32."""
    assert s == 1, "only stride 1 implemented (module default)"
    N, C, H, W = x.shape
    OC = weight.shape[0]
    Hp, Wp = H + 2 * p, W + 2 * p
    Ho, Wo = Hp - k + 1, Wp - k + 1
    OCp = ((OC + 127) // 128) * 128          # lane-dense output channels
    Wp8 = ((Wp + 7) // 8) * 8                # sublane-aligned row stride

    # --- pick the output-row tile so the pass-1 working set fits VMEM -----------
    xb = jnp.dtype(compute_dtype).itemsize
    per_row = Wp8 * (C * xb * 2 + OCp * (xb * 2 + 4))   # x dbl-buf + y dbl-buf + f32 acc
    th_target = max(1, (20 << 20) // max(per_row, 1))
    if row_tile is not None:
        th_target = min(th_target, row_tile)
    TH = _largest_divisor_leq(Ho, th_target)
    n_ht = Ho // TH

    S_tile = TH * Wp8                        # extended output rows per tile
    Sin_tile = (TH + k - 1) * Wp8            # input rows (incl. halo) per tile
    Sin_pad = Sin_tile + ((k - 1 + 7) // 8) * 8   # room for the last tap's +dw shift

    # --- glue: single width-padded NHWC copy, split into halo'd row tiles -------
    # (~(k-1)/TH duplicated input rows only.)
    # TODO(synk): replace the replicated halo with a manual halo DMA (pl.ANY +
    # make_async_copy) from an un-tiled HBM buffer to remove even that duplication.
    xp = jnp.pad(x, ((0, 0), (0, 0), (p, p), (p, p + Wp8 - Wp)))      # (N,C,Hp,Wp8)
    xn = xp.transpose(0, 2, 3, 1)                                     # (N,Hp,Wp8,C)
    x_tiled = jnp.stack(
        [xn[:, t * TH:t * TH + TH + k - 1] for t in range(n_ht)], axis=1)
    x_tiled = x_tiled.reshape(N, n_ht, Sin_tile, C)
    x_tiled = jnp.pad(
        x_tiled, ((0, 0), (0, 0), (0, Sin_pad - Sin_tile), (0, 0))).astype(compute_dtype)

    w_taps = weight.transpose(2, 3, 1, 0).reshape(k * k, C, OC)       # (k*k, C, OC)
    w_taps = jnp.pad(w_taps, ((0, 0), (0, 0), (0, OCp - OC))).astype(compute_dtype)

    vmem_limit = _vmem_limit_bytes()

    # --- pass 1: conv + per-(image, tile) BN partial statistics -----------------
    kernel1 = functools.partial(_conv_stats_kernel, k=k, row_stride=Wp8,
                                s_tile=S_tile, wo=Wo)
    y_full, ssum, ssq = pl.pallas_call(
        kernel1,
        grid=(N, n_ht),
        out_shape=(
            jax.ShapeDtypeStruct((N, n_ht, S_tile, OCp), compute_dtype),  # bf16 y
            jax.ShapeDtypeStruct((N, n_ht, 1, OCp), jnp.float32),
            jax.ShapeDtypeStruct((N, n_ht, 1, OCp), jnp.float32),
        ),
        in_specs=[
            pl.BlockSpec((None, None, Sin_pad, C), lambda n, t: (n, t, 0, 0)),
            # Grid-invariant weights.  TODO(synk): pipeline_mode=pl.Buffered(1)
            # to drop the second weight buffer once it is load-bearing on VMEM.
            pl.BlockSpec((k * k, C, OCp), lambda n, t: (0, 0, 0)),
        ],
        out_specs=(
            pl.BlockSpec((None, None, S_tile, OCp), lambda n, t: (n, t, 0, 0)),
            pl.BlockSpec((None, None, 1, OCp), lambda n, t: (n, t, 0, 0)),
            pl.BlockSpec((None, None, 1, OCp), lambda n, t: (n, t, 0, 0)),
        ),
        compiler_params=pltpu.CompilerParams(
            dimension_semantics=("parallel", "parallel"),
            vmem_limit_bytes=vmem_limit),
    )(x_tiled, w_taps)

    # --- tiny host-side reduction: batch stats -> folded scale/shift ------------
    # TODO(synk): E[y^2]-E[y]^2 in f32 can cancel for huge counts with |mean|>>std;
    # switch to centered/compensated accumulation if that regime appears.
    cnt = jnp.float32(N * Ho * Wo)
    s1 = jnp.sum(ssum.reshape(-1, OCp), axis=0)
    s2 = jnp.sum(ssq.reshape(-1, OCp), axis=0)
    mean = s1 / cnt
    var = jnp.maximum(s2 / cnt - mean * mean, 0.0)          # biased (training-mode)
    gamma_p = jnp.pad(gamma.astype(jnp.float32), (0, OCp - OC))
    beta_p = jnp.pad(beta.astype(jnp.float32), (0, OCp - OC))
    a = gamma_p * jax.lax.rsqrt(var + eps)
    b = beta_p - mean * a

    # --- pass 2: y*a + b + SiLU over lane-dense row tiles ------------------------
    NHo = N * Ho
    y2 = y_full.reshape(NHo, Wp8, OCp)                      # contiguous reshape
    per_row2 = Wp8 * OCp * xb * 2 + Wo * OCp * 4 * 2        # in dbl-buf + f32 out dbl-buf
    RT = int(max(1, min(NHo, (8 << 20) // max(per_row2, 1))))
    kernel2 = functools.partial(_bn_silu_kernel, wo=Wo)
    out2 = pl.pallas_call(
        kernel2,
        grid=(pl.cdiv(NHo, RT),),                           # ragged last block OK
        out_shape=jax.ShapeDtypeStruct((NHo, Wo, OCp), jnp.float32),
        in_specs=[
            pl.BlockSpec((RT, Wp8, OCp), lambda i: (i, 0, 0)),
            pl.BlockSpec((1, 1, OCp), lambda i: (0, 0, 0)),
            pl.BlockSpec((1, 1, OCp), lambda i: (0, 0, 0)),
        ],
        out_specs=pl.BlockSpec((RT, Wo, OCp), lambda i: (i, 0, 0)),
        compiler_params=pltpu.CompilerParams(
            dimension_semantics=("parallel",),
            vmem_limit_bytes=vmem_limit),
    )(y2, a.reshape(1, 1, OCp), b.reshape(1, 1, OCp))

    # --- glue: channel un-pad + NCHW (module contract) ---------------------------
    out = out2.reshape(N, Ho, Wo, OCp)[..., :OC].transpose(0, 3, 1, 2)
    return out


def reference(x, weight, gamma, beta, eps=1e-5):
    """Pure-JAX f32 reference matching the PyTorch module's training-mode forward."""
    y = jax.lax.conv_general_dilated(
        x, weight, window_strides=(1, 1), padding=[(1, 1), (1, 1)],
        dimension_numbers=("NCHW", "OIHW", "NCHW"))
    mean = jnp.mean(y, axis=(0, 2, 3), keepdims=True)
    var = jnp.mean(jnp.square(y - mean), axis=(0, 2, 3), keepdims=True)
    y = (y - mean) * jax.lax.rsqrt(var + eps)
    y = y * gamma.reshape(1, -1, 1, 1) + beta.reshape(1, -1, 1, 1)
    return y * jax.nn.sigmoid(y)


if __name__ == "__main__":
    # Small shapes consistent with the module: N=2, in_c=4, out_c=8, H=W=16, k=3.
    N, IN_C, OUT_C, H, W, K = 2, 4, 8, 16, 16, 3

    key = jax.random.PRNGKey(0)
    kx, kw = jax.random.split(key)
    x = jax.random.normal(kx, (N, IN_C, H, W), dtype=jnp.float32)
    fan_in = IN_C * K * K
    weight = jax.random.normal(kw, (OUT_C, IN_C, K, K), dtype=jnp.float32) * (2.0 / fan_in) ** 0.5
    gamma = jnp.ones((OUT_C,), dtype=jnp.float32)   # fresh BatchNorm2d defaults
    beta = jnp.zeros((OUT_C,), dtype=jnp.float32)

    ref = jax.block_until_ready(reference(x, weight, gamma, beta))

    # f32 path with 2 row tiles (exercises the halo'd S_out tiling): tight check.
    out_f32 = jax.block_until_ready(
        conv_bn_act(x, weight, gamma, beta, k=K, s=1, p=1,
                    compute_dtype=jnp.float32, row_tile=8))
    assert out_f32.shape == (N, OUT_C, H, W), out_f32.shape
    assert jnp.allclose(out_f32, ref, atol=1e-4, rtol=1e-4), \
        float(jnp.max(jnp.abs(out_f32 - ref)))

    # Default bf16 path (bf16 MXU inputs + bf16 conv intermediate): looser check.
    out_bf16 = jax.block_until_ready(conv_bn_act(x, weight, gamma, beta, k=K, s=1, p=1))
    assert out_bf16.shape == (N, OUT_C, H, W), out_bf16.shape
    assert jnp.allclose(out_bf16, ref, atol=2e-2, rtol=2e-2), \
        float(jnp.max(jnp.abs(out_bf16 - ref)))

    print("KERNEL_OK")
</pallas_src>

<mosaic_0001>
module attributes {stable_mosaic.version = 11 : i64} {
  func.func @_conv_stats_kernel(%arg0: i32, %arg1: i32, %arg2: memref<1x1x248x4xf32, #tpu.memory_space<vmem>>, %arg3: memref<9x4x128xf32, #tpu.memory_space<vmem>>, %arg4: memref<1x1x192x128xf32, #tpu.memory_space<vmem>>, %arg5: memref<1x1x1x128xf32, #tpu.memory_space<vmem>>, %arg6: memref<1x1x1x128xf32, #tpu.memory_space<vmem>>) attributes {dimension_semantics = [#tpu.dimension_semantics<parallel>, #tpu.dimension_semantics<parallel>], iteration_bounds = array<i64: 2, 2>, scalar_prefetch = 0 : i64, scratch_operands = 0 : i64, tpu.core_type = #tpu.core_type<tc>, window_params = [{transform_indices = @transform_0, window_bounds = array<i64: 1, 1, 248, 4>}, {pipeline_mode = #tpu.pipeline_mode<synchronous>, transform_indices = @transform_1, window_bounds = array<i64: 9, 4, 128>}, {transform_indices = @transform_2, window_bounds = array<i64: 1, 1, 192, 128>}, {transform_indices = @transform_3, window_bounds = array<i64: 1, 1, 1, 128>}, {transform_indices = @transform_4, window_bounds = array<i64: 1, 1, 1, 128>}]} {
    %c0 = arith.constant 0 : index
    %c0_0 = arith.constant 0 : index
    %c0_1 = arith.constant 0 : index
    %c0_2 = arith.constant 0 : index
    %0 = vector.load %arg2[%c0, %c0_0, %c0_1, %c0_2] : memref<1x1x248x4xf32, #tpu.memory_space<vmem>>, vector<1x1x192x4xf32>
    %1 = vector.shape_cast %0 : vector<1x1x192x4xf32> to vector<192x4xf32>
    %c0_3 = arith.constant 0 : index
    %c0_4 = arith.constant 0 : index
    %c0_5 = arith.constant 0 : index
    %2 = vector.load %arg3[%c0_3, %c0_4, %c0_5] : memref<9x4x128xf32, #tpu.memory_space<vmem>>, vector<1x4x128xf32>
    %3 = vector.shape_cast %2 : vector<1x4x128xf32> to vector<4x128xf32>
    %cst = arith.constant dense<0.000000e+00> : vector<192x128xf32>
    %4 = tpu.matmul %1, %3, %cst {dimension_numbers = #tpu.dot_dimension_numbers<[1], [0], [0], [1], [0, 0, 1, 1], [], []>} : vector<192x4xf32>, vector<4x128xf32>, vector<192x128xf32> -> vector<192x128xf32>
    %c0_6 = arith.constant 0 : index
    %c0_7 = arith.constant 0 : index
    %c1 = arith.constant 1 : index
    %c0_8 = arith.constant 0 : index
    %5 = vector.load %arg2[%c0_6, %c0_7, %c1, %c0_8] : memref<1x1x248x4xf32, #tpu.memory_space<vmem>>, vector<1x1x192x4xf32>
    %6 = vector.shape_cast %5 : vector<1x1x192x4xf32> to vector<192x4xf32>
    %c1_9 = arith.constant 1 : index
    %c0_10 = arith.constant 0 : index
    %c0_11 = arith.constant 0 : index
    %7 = vector.load %arg3[%c1_9, %c0_10, %c0_11] : memref<9x4x128xf32, #tpu.memory_space<vmem>>, vector<1x4x128xf32>
    %8 = vector.shape_cast %7 : vector<1x4x128xf32> to vector<4x128xf32>
    %cst_12 = arith.constant dense<0.000000e+00> : vector<192x128xf32>
    %9 = tpu.matmul %6, %8, %cst_12 {dimension_numbers = #tpu.dot_dimension_numbers<[1], [0], [0], [1], [0, 0, 1, 1], [], []>} : vector<192x4xf32>, vector<4x128xf32>, vector<192x128xf32> -> vector<192x128xf32>
    %10 = arith.addf %4, %9 : vector<192x128xf32>
    %c0_13 = arith.constant 0 : index
    %c0_14 = arith.constant 0 : index
    %c2 = arith.constant 2 : index
    %c0_15 = arith.constant 0 : index
    %11 = vector.load %arg2[%c0_13, %c0_14, %c2, %c0_15] : memref<1x1x248x4xf32, #tpu.memory_space<vmem>>, vector<1x1x192x4xf32>
    %12 = vector.shape_cast %11 : vector<1x1x192x4xf32> to vector<192x4xf32>
    %c2_16 = arith.constant 2 : index
    %c0_17 = arith.constant 0 : index
    %c0_18 = arith.constant 0 : index
    %13 = vector.load %arg3[%c2_16, %c0_17, %c0_18] : memref<9x4x128xf32, #tpu.memory_space<vmem>>, vector<1x4x128xf32>
    %14 = vector.shape_cast %13 : vector<1x4x128xf32> to vector<4x128xf32>
    %cst_19 = arith.constant dense<0.000000e+00> : vector<192x128xf32>
    %15 = tpu.matmul %12, %14, %cst_19 {dimension_numbers = #tpu.dot_dimension_numbers<[1], [0], [0], [1], [0, 0, 1, 1], [], []>} : vector<192x4xf32>, vector<4x128xf32>, vector<192x128xf32> -> vector<192x128xf32>
    %16 = arith.addf %10, %15 : vector<192x128xf32>
    %c0_20 = arith.constant 0 : index
    %c0_21 = arith.constant 0 : index
    %c24 = arith.constant 24 : index
    %c0_22 = arith.constant 0 : index
    %17 = vector.load %arg2[%c0_20, %c0_21, %c24, %c0_22] : memref<1x1x248x4xf32, #tpu.memory_space<vmem>>, vector<1x1x192x4xf32>
    %18 = vector.shape_cast %17 : vector<1x1x192x4xf32> to vector<192x4xf32>
    %c3 = arith.constant 3 : index
    %c0_23 = arith.constant 0 : index
    %c0_24 = arith.constant 0 : index
    %19 = vector.load %arg3[%c3, %c0_23, %c0_24] : memref<9x4x128xf32, #tpu.memory_space<vmem>>, vector<1x4x128xf32>
    %20 = vector.shape_cast %19 : vector<1x4x128xf32> to vector<4x128xf32>
    %cst_25 = arith.constant dense<0.000000e+00> : vector<192x128xf32>
    %21 = tpu.matmul %18, %20, %cst_25 {dimension_numbers = #tpu.dot_dimension_numbers<[1], [0], [0], [1], [0, 0, 1, 1], [], []>} : vector<192x4xf32>, vector<4x128xf32>, vector<192x128xf32> -> vector<192x128xf32>
    %c0_26 = arith.constant 0 : index
    %c0_27 = arith.constant 0 : index
    %c25 = arith.constant 25 : index
    %c0_28 = arith.constant 0 : index
    %22 = vector.load %arg2[%c0_26, %c0_27, %c25, %c0_28] : memref<1x1x248x4xf32, #tpu.memory_space<vmem>>, vector<1x1x192x4xf32>
    %23 = vector.shape_cast %22 : vector<1x1x192x4xf32> to vector<192x4xf32>
    %c4 = arith.constant 4 : index
    %c0_29 = arith.constant 0 : index
    %c0_30 = arith.constant 0 : index
    %24 = vector.load %arg3[%c4, %c0_29, %c0_30] : memref<9x4x128xf32, #tpu.memory_space<vmem>>, vector<1x4x128xf32>
    %25 = vector.shape_cast %24 : vector<1x4x128xf32> to vector<4x128xf32>
    %cst_31 = arith.constant dense<0.000000e+00> : vector<192x128xf32>
    %26 = tpu.matmul %23, %25, %cst_31 {dimension_numbers = #tpu.dot_dimension_numbers<[1], [0], [0], [1], [0, 0, 1, 1], [], []>} : vector<192x4xf32>, vector<4x128xf32>, vector<192x128xf32> -> vector<192x128xf32>
    %27 = arith.addf %21, %26 : vector<192x128xf32>
    %c0_32 = arith.constant 0 : index
    %c0_33 = arith.constant 0 : index
    %c26 = arith.constant 26 : index
    %c0_34 = arith.constant 0 : index
    %28 = vector.load %arg2[%c0_32, %c0_33, %c26, %c0_34] : memref<1x1x248x4xf32, #tpu.memory_space<vmem>>, vector<1x1x192x4xf32>
    %29 = vector.shape_cast %28 : vector<1x1x192x4xf32> to vector<192x4xf32>
    %c5 = arith.constant 5 : index
    %c0_35 = arith.constant 0 : index
    %c0_36 = arith.constant 0 : index
    %30 = vector.load %arg3[%c5, %c0_35, %c0_36] : memref<9x4x128xf32, #tpu.memory_space<vmem>>, vector<1x4x128xf32>
    %31 = vector.shape_cast %30 : vector<1x4x128xf32> to vector<4x128xf32>
    %cst_37 = arith.constant dense<0.000000e+00> : vector<192x128xf32>
    %32 = tpu.matmul %29, %31, %cst_37 {dimension_numbers = #tpu.dot_dimension_numbers<[1], [0], [0], [1], [0, 0, 1, 1], [], []>} : vector<192x4xf32>, vector<4x128xf32>, vector<192x128xf32> -> vector<192x128xf32>
    %33 = arith.addf %27, %32 : vector<192x128xf32>
    %34 = arith.addf %16, %33 : vector<192x128xf32>
    %c0_38 = arith.constant 0 : index
    %c0_39 = arith.constant 0 : index
    %c48 = arith.constant 48 : index
    %c0_40 = arith.constant 0 : index
    %35 = vector.load %arg2[%c0_38, %c0_39, %c48, %c0_40] : memref<1x1x248x4xf32, #tpu.memory_space<vmem>>, vector<1x1x192x4xf32>
    %36 = vector.shape_cast %35 : vector<1x1x192x4xf32> to vector<192x4xf32>
    %c6 = arith.constant 6 : index
    %c0_41 = arith.constant 0 : index
    %c0_42 = arith.constant 0 : index
    %37 = vector.load %arg3[%c6, %c0_41, %c0_42] : memref<9x4x128xf32, #tpu.memory_space<vmem>>, vector<1x4x128xf32>
    %38 = vector.shape_cast %37 : vector<1x4x128xf32> to vector<4x128xf32>
    %cst_43 = arith.constant dense<0.000000e+00> : vector<192x128xf32>
    %39 = tpu.matmul %36, %38, %cst_43 {dimension_numbers = #tpu.dot_dimension_numbers<[1], [0], [0], [1], [0, 0, 1, 1], [], []>} : vector<192x4xf32>, vector<4x128xf32>, vector<192x128xf32> -> vector<192x128xf32>
    %c0_44 = arith.constant 0 : index
    %c0_45 = arith.constant 0 : index
    %c49 = arith.constant 49 : index
    %c0_46 = arith.constant 0 : index
    %40 = vector.load %arg2[%c0_44, %c0_45, %c49, %c0_46] : memref<1x1x248x4xf32, #tpu.memory_space<vmem>>, vector<1x1x192x4xf32>
    %41 = vector.shape_cast %40 : vector<1x1x192x4xf32> to vector<192x4xf32>
    %c7 = arith.constant 7 : index
    %c0_47 = arith.constant 0 : index
    %c0_48 = arith.constant 0 : index
    %42 = vector.load %arg3[%c7, %c0_47, %c0_48] : memref<9x4x128xf32, #tpu.memory_space<vmem>>, vector<1x4x128xf32>
    %43 = vector.shape_cast %42 : vector<1x4x128xf32> to vector<4x128xf32>
    %cst_49 = arith.constant dense<0.000000e+00> : vector<192x128xf32>
    %44 = tpu.matmul %41, %43, %cst_49 {dimension_numbers = #tpu.dot_dimension_numbers<[1], [0], [0], [1], [0, 0, 1, 1], [], []>} : vector<192x4xf32>, vector<4x128xf32>, vector<192x128xf32> -> vector<192x128xf32>
    %45 = arith.addf %39, %44 : vector<192x128xf32>
    %c0_50 = arith.constant 0 : index
    %c0_51 = arith.constant 0 : index
    %c50 = arith.constant 50 : index
    %c0_52 = arith.constant 0 : index
    %46 = vector.load %arg2[%c0_50, %c0_51, %c50, %c0_52] : memref<1x1x248x4xf32, #tpu.memory_space<vmem>>, vector<1x1x192x4xf32>
    %47 = vector.shape_cast %46 : vector<1x1x192x4xf32> to vector<192x4xf32>
    %c8 = arith.constant 8 : index
    %c0_53 = arith.constant 0 : index
    %c0_54 = arith.constant 0 : index
    %48 = vector.load %arg3[%c8, %c0_53, %c0_54] : memref<9x4x128xf32, #tpu.memory_space<vmem>>, vector<1x4x128xf32>
    %49 = vector.shape_cast %48 : vector<1x4x128xf32> to vector<4x128xf32>
    %cst_55 = arith.constant dense<0.000000e+00> : vector<192x128xf32>
    %50 = tpu.matmul %47, %49, %cst_55 {dimension_numbers = #tpu.dot_dimension_numbers<[1], [0], [0], [1], [0, 0, 1, 1], [], []>} : vector<192x4xf32>, vector<4x128xf32>, vector<192x128xf32> -> vector<192x128xf32>
    %51 = arith.addf %45, %50 : vector<192x128xf32>
    %52 = arith.addf %34, %51 : vector<192x128xf32>
    %53 = tpu.iota {dimensions = array<i32: 0>} : vector<192x1xi32>
    %c24_i32 = arith.constant 24 : i32
    %c0_i32 = arith.constant 0 : i32
    %54 = arith.cmpi eq, %c24_i32, %c0_i32 : i32
    %c1_i32 = arith.constant 1 : i32
    %55 = arith.select %54, %c1_i32, %c24_i32 : i32
    %56 = vector.broadcast %55 : i32 to vector<192x1xi32>
    %57 = arith.remsi %53, %56 : vector<192x1xi32>
    %c0_i32_56 = arith.constant 0 : i32
    %58 = vector.broadcast %c0_i32_56 : i32 to vector<192x1xi32>
    %59 = arith.cmpi ne, %57, %58 : vector<192x1xi32>
    %c0_i32_57 = arith.constant 0 : i32
    %60 = vector.broadcast %c0_i32_57 : i32 to vector<192x1xi32>
    %61 = arith.cmpi slt, %57, %60 : vector<192x1xi32>
    %c0_i32_58 = arith.constant 0 : i32
    %62 = arith.cmpi slt, %55, %c0_i32_58 : i32
    %63 = vector.broadcast %62 : i1 to vector<192x1xi1>
    %64 = vector.broadcast %63 : vector<192x1xi1> to vector<192x1xi1>
    %65 = arith.xori %61, %64 : vector<192x1xi1>
    %66 = arith.andi %65, %59 : vector<192x1xi1>
    %67 = vector.broadcast %55 : i32 to vector<192x1xi32>
    %68 = arith.addi %57, %67 : vector<192x1xi32>
    %69 = arith.select %66, %68, %57 : vector<192x1xi1>, vector<192x1xi32>
    %c16_i32 = arith.constant 16 : i32
    %70 = vector.broadcast %c16_i32 : i32 to vector<192x1xi32>
    %71 = arith.cmpi slt, %69, %70 : vector<192x1xi32>
    %72 = arith.extui %71 : vector<192x1xi1> to vector<192x1xi32>
    %73 = arith.sitofp %72 : vector<192x1xi32> to vector<192x1xf32>
    %74 = vector.broadcast %73 : vector<192x1xf32> to vector<192x128xf32>
    %75 = arith.mulf %52, %74 : vector<192x128xf32>
    %cst_59 = arith.constant dense<0.000000e+00> : vector<128xf32>
    %76 = vector.multi_reduction <add>, %75, %cst_59 [0] : vector<192x128xf32> to vector<128xf32>
    %77 = vector.shape_cast %76 : vector<128xf32> to vector<1x128xf32>
    %c0_60 = arith.constant 0 : index
    %c0_61 = arith.constant 0 : index
    %c0_62 = arith.constant 0 : index
    %c0_63 = arith.constant 0 : index
    %78 = vector.load %arg5[%c0_60, %c0_61, %c0_62, %c0_63] : memref<1x1x1x128xf32, #tpu.memory_space<vmem>>, vector<1x1x1x128xf32>
    %79 = vector.shape_cast %78 : vector<1x1x1x128xf32> to vector<1x128xf32>
    %80 = vector.shape_cast %77 : vector<1x128xf32> to vector<1x1x1x128xf32>
    tpu.vector_store %arg5[%c0_60, %c0_61, %c0_62, %c0_63], %80 {strides = array<i32>} : memref<1x1x1x128xf32, #tpu.memory_space<vmem>>, vector<1x1x1x128xf32>,
    %81 = arith.mulf %75, %52 : vector<192x128xf32>
    %cst_64 = arith.constant dense<0.000000e+00> : vector<128xf32>
    %82 = vector.multi_reduction <add>, %81, %cst_64 [0] : vector<192x128xf32> to vector<128xf32>
    %83 = vector.shape_cast %82 : vector<128xf32> to vector<1x128xf32>
    %c0_65 = arith.constant 0 : index
    %c0_66 = arith.constant 0 : index
    %c0_67 = arith.constant 0 : index
    %c0_68 = arith.constant 0 : index
    %84 = vector.load %arg6[%c0_65, %c0_66, %c0_67, %c0_68] : memref<1x1x1x128xf32, #tpu.memory_space<vmem>>, vector<1x1x1x128xf32>
    %85 = vector.shape_cast %84 : vector<1x1x1x128xf32> to vector<1x128xf32>
    %86 = vector.shape_cast %83 : vector<1x128xf32> to vector<1x1x1x128xf32>
    tpu.vector_store %arg6[%c0_65, %c0_66, %c0_67, %c0_68], %86 {strides = array<i32>} : memref<1x1x1x128xf32, #tpu.memory_space<vmem>>, vector<1x1x1x128xf32>,
    %c0_69 = arith.constant 0 : index
    %c0_70 = arith.constant 0 : index
    %c0_71 = arith.constant 0 : index
    %c0_72 = arith.constant 0 : index
    %87 = vector.load %arg4[%c0_69, %c0_70, %c0_71, %c0_72] : memref<1x1x192x128xf32, #tpu.memory_space<vmem>>, vector<1x1x192x128xf32>
    %88 = vector.shape_cast %87 : vector<1x1x192x128xf32> to vector<192x128xf32>
    %89 = vector.shape_cast %52 : vector<192x128xf32> to vector<1x1x192x128xf32>
    tpu.vector_store %arg4[%c0_69, %c0_70, %c0_71, %c0_72], %89 {strides = array<i32>} : memref<1x1x192x128xf32, #tpu.memory_space<vmem>>, vector<1x1x192x128xf32>,
    return
  }
  func.func @transform_0(%arg0: i32, %arg1: i32) -> (i32, i32, i32, i32) {
    %c0_i32 = arith.constant 0 : i32
    %c0_i32_0 = arith.constant 0 : i32
    %c0_i32_1 = arith.constant 0 : i32
    return %arg0, %arg1, %c0_i32, %c0_i32_0 : i32, i32, i32, i32
  }
  func.func @transform_1(%arg0: i32, %arg1: i32) -> (i32, i32, i32) {
    %c0_i32 = arith.constant 0 : i32
    %c0_i32_0 = arith.constant 0 : i32
    %c0_i32_1 = arith.constant 0 : i32
    %c0_i32_2 = arith.constant 0 : i32
    return %c0_i32, %c0_i32_0, %c0_i32_1 : i32, i32, i32
  }
  func.func @transform_2(%arg0: i32, %arg1: i32) -> (i32, i32, i32, i32) {
    %c0_i32 = arith.constant 0 : i32
    %c0_i32_0 = arith.constant 0 : i32
    %c0_i32_1 = arith.constant 0 : i32
    return %arg0, %arg1, %c0_i32, %c0_i32_0 : i32, i32, i32, i32
  }
  func.func @transform_3(%arg0: i32, %arg1: i32) -> (i32, i32, i32, i32) {
    %c0_i32 = arith.constant 0 : i32
    %c0_i32_0 = arith.constant 0 : i32
    %c0_i32_1 = arith.constant 0 : i32
    return %arg0, %arg1, %c0_i32, %c0_i32_0 : i32, i32, i32, i32
  }
  func.func @transform_4(%arg0: i32, %arg1: i32) -> (i32, i32, i32, i32) {
    %c0_i32 = arith.constant 0 : i32
    %c0_i32_0 = arith.constant 0 : i32
    %c0_i32_1 = arith.constant 0 : i32
    return %arg0, %arg1, %c0_i32, %c0_i32_0 : i32, i32, i32, i32
  }
}

</mosaic_0001>

<bundles_post_ra>
// kernel: tpu_custom_call.1
= control target key start
LH: loop header
LB: loop body
LE: loop exit
PB: predicated region body
PF: predicated region fallthrough
CT: control target
= control target key end

     0   :  { %10 = vsyncpa [#allocation3], 0  ;;  %s6848_s0 = inlined_call_operand.vmem [shape: f32[2,2,248,4], index: 0, kind: input, shape index: {}]   ;;  %s6849_s1 = inlined_call_operand.vmem [shape: f32[9,4,128], index: 1, kind: input, shape index: {}]   ;;  %s6850_s2 = inlined_call_operand.hbm [shape: f32[2,2,192,128], index: 2, kind: output, shape index: {0}]   ;;  %s6851_s3 = inlined_call_operand.hbm [shape: f32[2,2,1,128], index: 3, kind: output, shape index: {1}]   ;;  %s6852_s4 = inlined_call_operand.hbm [shape: f32[2,2,1,128], index: 4, kind: output, shape index: {2}]  }
   0x1   :  { %12 = vsyncpa [#allocation3 + $0x1], 0 }
   0x2   :  { %13 = vsyncpa [#allocation5], 0 }
   0x3   :  { %15 = vsyncpa [#allocation5 + $0x1], 0  ;;  %s5103_s15 = smov 0   ;;  %s5105_s16 = smov 0  }
   0x4   :  { %s5107_s17 = smov 0   ;;  %s5109_s18 = smov 0  }
   0x5   :  { %s5111_s19 = smov 0   ;;  %s5113_s20 = smov 0  }
   0x6   :  { %s5115_s21 = smov 0   ;;  %s5117_s22 = smov 0  }
   0x7 LB: > { %s3748_s23 = sadd.s32 4294967295, %s5070_s22   ;;  %s6858_s24 = sadd.s32 4294967294, %s5070_s22   ;;  %s5070_s22 = sphi %s5117_s22, %s21_s22   ;;  %s5066_s21 = sphi %s5115_s21, %s6976_s21   ;;  %s5062_s20 = sphi %s5113_s20, %s6975_s20   ;;  %s5058_s19 = sphi %s5111_s19, %s6974_s19   ;;  %s5054_s18 = sphi %s5109_s18, %s6973_s18   ;;  %s5050_s17 = sphi %s5107_s17, %s6972_s17   ;;  %s5046_s16 = sphi %s5105_s16, %s6971_s16   ;;  %s5042_s15 = sphi %s5103_s15, %s6970_s15  }
   0x8   : > { %s30_s25 = sadd.s32 1, %s5062_s20  ;;  %s33_s26 = sadd.s32 1, %s5066_s21 }
   0x9   : > { %p31_p0 = scmp.ge.s32.totalorder %s30_s25, 2  ;;  %p101_p1 = scmp.ne.s32.totalorder %s5050_s17, %s5046_s16 }
   0xa   : > { %p102_p2 = scmp.eq.s32.totalorder %s3748_s23, 3  ;;  %p107_p5 = scmp.ne.s32.totalorder %s5046_s16, %s5042_s15 }
   0xb   : > { %s6978_s25 = smov (%p31_p0, %s30_s25), 0  ;;  %s6980_s26 = smov (!%p31_p0, %s33_s26), %s5066_s21 }
   0xc   : > { %s87_s27 = ssub.s32 %s5062_s20, %s6978_s25  ;;  %p5156_p3 = por %p102_p2, %p101_p1 }
   0xd   : > { %p35_p4 = scmp.ge.s32.totalorder %s6980_s26, 2  ;;  %p108_p6 = scmp.eq.s32.totalorder %s6858_s24, 3 }
   0xe   : > { %p3752_p7 = scmp.ge.s32.totalorder %s5070_s22, 1  ;;  %p197_p9 = scmp.lt.s32.totalorder %s5070_s22, 5 }
   0xf   : > { %s6982_s26 = smov (%p35_p4, %s6980_s26), 0  ;;  %p5167_p8 = por %p108_p6, %p107_p5 }
  0x10   : > { %s86_s30 = ssub.s32 %s5066_s21, %s6982_s26  ;;  %s91_s5 = sadd.s32 1, %s5050_s17 }
  0x11   : > { %s88_s6 = sor.u32 %s87_s27, %s86_s30  ;;  %p198_p10 = pnand %p3752_p7, %p197_p9 }
  0x12   : > { %p89_p11 = scmp.eq.s32.totalorder %s88_s6, 0 }
  0x13   : > { %201 = sbr.rel (%p198_p10) target bundleno = 531 (0x213), region = 28 }
  0x14   : > { %s5176_s7 = scalar_select %p89_p11, %s5050_s17, %s91_s5  }
  0x1a   : > { %v3754_v0 = vld [vmem:[%s6849_s1 + $0x4] sm:$0xf]  ;;  %vm368_vm0 = vcmask 1043456   ;;  %v5184_v1 = vld [vmem:[%s6849_s1 + $0xc] sm:$0xf]  ;;  %p235_p12 = scmp.lt.s32.totalorder %s5058_s19, 1 }
  0x1b   : > { %4243 = vmatprep.subr.msk.mxu1 %vm368_vm0, %v3754_v0  ;;  %4395 = vmatprep.subr.msk.mxu0 %vm368_vm0, %v5184_v1  ;;  %p237_p13 = scmp.lt.s32.totalorder %s5054_s18, 1  ;;  %v268_v2 = vld [vmem:[%s6849_s1] sm:$0xf]  ;;  %v3883_v3 = vld [vmem:[%s6849_s1 + $0x14] sm:$0xf]  ;;  %vm295_vm1 = vcmask 31744  }
  0x1c   : > { %4244 = vmatpush3.msk.msra.mxu1 %vm368_vm0, %v3754_v0  ;;  %4396 = vmatpush3.msk.msra.mxu0 %vm368_vm0, %v5184_v1  ;;  %s236_s30 = scalar_select %p235_p12, %s5058_s19, 1  ;;  %v3910_v10 = vld [vmem:[%s6849_s1 + $0x1c] sm:$0xf]  ;;  %v5233_v11 = vld [vmem:[%s6849_s1 + $0x8] sm:$0xf] }
  0x1d   : > { %s238_s5 = scalar_select %p237_p13, %s5054_s18, 1  ;;  %4281 = vmatprep.subr.msk.mxu1 %vm368_vm0, %v268_v2  ;;  %4433 = vmatprep.subr.msk.mxu0 %vm368_vm0, %v3883_v3  ;;  %v5358_v36 = vld [vmem:[%s6849_s1 + $0x18] sm:$0xf]  ;;  %v5479_v61 = vld [vmem:[%s6849_s1 + $0x10] sm:$0xf] }
  0x1e   : > { %s4781_s6 = smul.u32 62, %s236_s30 }
  0x1f   : > { %s4780_s8 = smul.u32 31, %s238_s5 }
  0x20   : > { %s4830_s30 = smul.u32 24, %s5054_s18 }
  0x21   : > { %s241_s9 = sadd.s32 %s4781_s6, %s4780_s8  ;;  %s4831_s5 = smul.u32 48, %s5058_s19 }
  0x22   : > { %s3753_s10 = sshll.u32 %s241_s9, 3 }
  0x23   : > { %s5207_s13 = scalar_lea.vmem %s6848_s0, %s3753_s10  ;;  %s6688_s6 = sadd.s32 %s4831_s5, %s4830_s30 }
  0x24   : > { %v269_v4 = vld [vmem:[%s5207_s13 + $0x1] sm:$0xff]  ;;  %v5211_v5 = vld [vmem:[%s5207_s13 + $0x18] sm:$0xff]  ;;  %v270_v6 = vld [vmem:[%s5207_s13 + $0x9] sm:$0xff]  ;;  %s4011_s8 = sshll.u32 %s6688_s6, 7  ;;  %s5073_s5 = smov [#allocation2]  }
  0x25   : > { %4245 = vmatprep.mubr.msk.f32.mxu1 %vm295_vm1, %v269_v4  ;;  %4397 = vmatprep.mubr.msk.f32.mxu0 %vm295_vm1, %v5211_v5  ;;  %v5218_v7 = vld [vmem:[%s5207_s13 + $0x20] sm:$0xff]  ;;  %v271_v8 = vld [vmem:[%s5207_s13 + $0x11] sm:$0xff]  ;;  %v5222_v9 = vld [vmem:[%s5207_s13 + $0x28] sm:$0xff]  ;;  %s6715_s12 = scalar_lea.hbm %s6850_s2, %s4011_s8  ;;  %s4920_s6 = sshll.u32 %s5073_s5, 4  ;;  %s4921_s6 = int_to_ptr.vmem [resolvable:$false] %s4920_s6 }
  0x26   : > { %4246 = vmatmul.mubr.msk.f32.vlgmr.msra.gmra.mrb[0].mxu1 %vm295_vm1, %v270_v6  ;;  %4398 = vmatmul.mubr.msk.f32.vlgmr.msra.gmra.mrb[0].mxu0 %vm295_vm1, %v5218_v7  ;;  %v5238_v12 = vld [vmem:[%s5207_s13 + $0x19] sm:$0xff]  ;;  %v5241_v13 = vld [vmem:[%s5207_s13 + $0x30] sm:$0xff]  ;;  %v5247_v14 = vld [vmem:[%s5207_s13 + $0x21] sm:$0xff]  ;;  %s4922_s8 = scalar_lea.vmem %s4921_s6, 6144 }
  0x27   : > { %4282 = vmatpush3.msk.msra.mxu1 %vm368_vm0, %v268_v2  ;;  %4434 = vmatpush3.msk.msra.mxu0 %vm368_vm0, %v3883_v3  ;;  %v5250_v15 = vld [vmem:[%s5207_s13 + $0x38] sm:$0xff]  ;;  %v5264_v16 = vld [vmem:[%s5207_s13 + $0x29] sm:$0xff]  ;;  %v5267_v17 = vld [vmem:[%s5207_s13 + $0x40] sm:$0xff] }
  0x28   : > { %4248 = vmatprep.mubr.msk.f32.mxu1 %vm295_vm1, %v271_v8  ;;  %4400 = vmatprep.mubr.msk.f32.mxu0 %vm295_vm1, %v5222_v9  ;;  %v5270_v18 = vld [vmem:[%s5207_s13 + $0x31] sm:$0xff]  ;;  %v5273_v19 = vld [vmem:[%s5207_s13 + $0x48] sm:$0xff]  ;;  %v5284_v20 = vld [vmem:[%s5207_s13 + $0x39] sm:$0xff] }
  0x29   : > { %4471 = vmatprep.subr.msk.mxu0 %vm368_vm0, %v3910_v10  ;;  %4319 = vmatprep.subr.msk.mxu1 %vm368_vm0, %v5233_v11  ;;  %v5287_v21 = vld [vmem:[%s5207_s13 + $0x50] sm:$0xff]  ;;  %v5290_v22 = vld [vmem:[%s5207_s13 + $0x41] sm:$0xff]  ;;  %v5293_v23 = vld [vmem:[%s5207_s13 + $0x58] sm:$0xff] }
  0x2a   : > { %4249 = vmatmul.mubr.msk.f32.gmra.mrb[2].mxu1 %vm295_vm1, %v5238_v12  ;;  %4401 = vmatmul.mubr.msk.f32.gmra.mrb[2].mxu0 %vm295_vm1, %v5241_v13  ;;  %v5304_v24 = vld [vmem:[%s5207_s13 + $0x49] sm:$0xff]  ;;  %v5307_v25 = vld [vmem:[%s5207_s13 + $0x60] sm:$0xff]  ;;  %v5310_v26 = vld [vmem:[%s5207_s13 + $0x51] sm:$0xff] }
  0x2b   : > { %4251 = vmatprep.mubr.msk.f32.mxu1 %vm295_vm1, %v5247_v14  ;;  %4403 = vmatprep.mubr.msk.f32.mxu0 %vm295_vm1, %v5250_v15  ;;  %v5313_v27 = vld [vmem:[%s5207_s13 + $0x68] sm:$0xff]  ;;  %v5324_v28 = vld [vmem:[%s5207_s13 + $0x59] sm:$0xff]  ;;  %v5327_v29 = vld [vmem:[%s5207_s13 + $0x70] sm:$0xff] }
  0x2c   : > { %v5330_v30 = vld [vmem:[%s5207_s13 + $0x61] sm:$0xff]  ;;  %v5344_v32 = vld [vmem:[%s5207_s13 + $0x69] sm:$0xff]  ;;  %v5350_v34 = vld [vmem:[%s5207_s13 + $0x71] sm:$0xff] }
  0x2d   : > { %v5333_v31 = vld [vmem:[%s5207_s13 + $0x1a] sm:$0xff]  ;;  %v5347_v33 = vld [vmem:[%s5207_s13 + $0x22] sm:$0xff]  ;;  %6862 = vst [vmem:[#allocation9_spill] sm:$0xff] %v5350_v34  ;;  %v5353_v35 = vld [vmem:[%s5207_s13 + $0x2a] sm:$0xff] }
  0x2e   : > { %4252 = vmatmul.mubr.msk.f32.gmra.mrb[4].mxu1 %vm295_vm1, %v5264_v16  ;;  %4404 = vmatmul.mubr.msk.f32.gmra.mrb[4].mxu0 %vm295_vm1, %v5267_v17  ;;  %v5368_v37 = vld [vmem:[%s5207_s13 + $0x79] sm:$0xff]  ;;  %v5376_v39 = vld [vmem:[%s5207_s13 + $0x81] sm:$0xff]  ;;  %v5392_v41 = vld [vmem:[%s5207_s13 + $0x89] sm:$0xff] }
  0x2f   : > { %4254 = vmatprep.mubr.msk.f32.mxu1 %vm295_vm1, %v5270_v18  ;;  %4406 = vmatprep.mubr.msk.f32.mxu0 %vm295_vm1, %v5273_v19  ;;  %6863 = vst [vmem:[#allocation10_spill] sm:$0xff] %v5368_v37  ;;  %v5371_v38 = vld [vmem:[%s5207_s13 + $0x32] sm:$0xff]  ;;  %v5379_v40 = vld [vmem:[%s5207_s13 + $0x3a] sm:$0xff]  ;;  %v5395_v42 = vld [vmem:[%s5207_s13 + $0x42] sm:$0xff] }
  0x30   : > { %v5398_v43 = vld [vmem:[%s5207_s13 + $0x91] sm:$0xff]  ;;  %v5412_v45 = vld [vmem:[%s5207_s13 + $0x99] sm:$0xff]  ;;  %v5418_v47 = vld [vmem:[%s5207_s13 + $0xa1] sm:$0xff] }
  0x31   : > { %v5401_v44 = vld [vmem:[%s5207_s13 + $0x4a] sm:$0xff]  ;;  %v5415_v46 = vld [vmem:[%s5207_s13 + $0x52] sm:$0xff]  ;;  %v5421_v48 = vld [vmem:[%s5207_s13 + $0x5a] sm:$0xff] }
  0x32   : > { %4255 = vmatmul.mubr.msk.f32.gmra.mrb[6].mxu1 %vm295_vm1, %v5284_v20  ;;  %4407 = vmatmul.mubr.msk.f32.gmra.mrb[6].mxu0 %vm295_vm1, %v5287_v21  ;;  %v5432_v49 = vld [vmem:[%s5207_s13 + $0xa9] sm:$0xff]  ;;  %v5438_v51 = vld [vmem:[%s5207_s13 + $0xb1] sm:$0xff]  ;;  %v5452_v53 = vld [vmem:[%s5207_s13 + $0xb9] sm:$0xff] }
  0x33   : > { %4257 = vmatprep.mubr.msk.f32.mxu1 %vm295_vm1, %v5290_v22  ;;  %4409 = vmatprep.mubr.msk.f32.mxu0 %vm295_vm1, %v5293_v23  ;;  %v5435_v50 = vld [vmem:[%s5207_s13 + $0x62] sm:$0xff]  ;;  %v5441_v52 = vld [vmem:[%s5207_s13 + $0x6a] sm:$0xff]  ;;  %v5455_v54 = vld [vmem:[%s5207_s13 + $0x72] sm:$0xff] }
  0x34   : > { %v244_v55 = vld [vmem:[%s5207_s13] sm:$0xff]  ;;  %v245_v57 = vld [vmem:[%s5207_s13 + $0x8] sm:$0xff]  ;;  %v246_v59 = vld [vmem:[%s5207_s13 + $0x10] sm:$0xff] }
  0x35   : > { %v5459_v56 = vld [vmem:[%s5207_s13 + $0x7a] sm:$0xff]  ;;  %v5470_v58 = vld [vmem:[%s5207_s13 + $0x82] sm:$0xff]  ;;  %v5474_v60 = vld [vmem:[%s5207_s13 + $0x8a] sm:$0xff] }
  0x36   : > { %4258 = vmatmul.mubr.msk.f32.gmra.mrb[8].mxu1 %vm295_vm1, %v5304_v24  ;;  %4410 = vmatmul.mubr.msk.f32.gmra.mrb[8].mxu0 %vm295_vm1, %v5307_v25  ;;  %v5488_v62 = vld [vmem:[%s5207_s13 + $0x92] sm:$0xff]  ;;  %v5493_v63 = vld [vmem:[%s5207_s13 + $0x9a] sm:$0xff]  ;;  %v5506_v0 = vld [vmem:[%s5207_s13 + $0xa2] sm:$0xff] }
  0x37   : > { %4260 = vmatprep.mubr.msk.f32.mxu1 %vm295_vm1, %v5310_v26  ;;  %4412 = vmatprep.mubr.msk.f32.mxu0 %vm295_vm1, %v5313_v27  ;;  %v5509_v2 = vld [vmem:[%s5207_s13 + $0xaa] sm:$0xff]  ;;  %v5520_v3 = vld [vmem:[%s5207_s13 + $0xb2] sm:$0xff]  ;;  %v5523_v4 = vld [vmem:[%s5207_s13 + $0xba] sm:$0xff] }
  0x38   : > { %v5537_v6 = vld [vmem:[%s5207_s13 + $0xca] sm:$0xff]  ;;  %v5561_v8 = vld [vmem:[%s6849_s1 + $0x20] sm:$0xf] }
  0x39   : > { %6865 = vst [vmem:[#allocation12_spill] sm:$0xff] %v5537_v6 }
  0x3a   : > { %4261 = vmatmul.mubr.msk.f32.gmra.mrb[10].mxu1 %vm295_vm1, %v5324_v28  ;;  %4413 = vmatmul.mubr.msk.f32.gmra.mrb[10].mxu0 %vm295_vm1, %v5327_v29 }
  0x3b   : > { %4263 = vmatprep.mubr.msk.f32.mxu1 %vm295_vm1, %v5330_v30  ;;  %4435 = vmatprep.mubr.msk.f32.mxu0 %vm295_vm1, %v5333_v31 }
  0x3e   : > { %4264 = vmatmul.mubr.msk.f32.gmra.mrb[12].mxu1 %vm295_vm1, %v5344_v32  ;;  %4436 = vmatmul.mubr.msk.f32.vlgmr.msra.gmra.mrb[0].mxu0 %vm295_vm1, %v5347_v33 }
  0x3f   : > { %4472 = vmatpush3.msk.msra.mxu0 %vm368_vm0, %v3910_v10  ;;  %4266 = vmatprep.mubr.msk.f32.mxu1 %vm295_vm1, %v5350_v34  ;;  %v5577_v10 = vld [vmem:[%s5207_s13 + $0x80] sm:$0xff] }
  0x40   : > { %4438 = vmatprep.mubr.msk.f32.mxu0 %vm295_vm1, %v5353_v35  ;;  %4509 = vmatprep.subr.msk.mxu0 %vm368_vm0, %v5358_v36 }
  0x42   : > { %4267 = vmatmul.mubr.msk.f32.gmra.mrb[14].mxu1 %vm295_vm1, %v5368_v37  ;;  %4439 = vmatmul.mubr.msk.f32.gmra.mrb[2].mxu0 %vm295_vm1, %v5371_v38 }
  0x43   : > { %4269 = vmatprep.mubr.msk.f32.mxu1 %vm295_vm1, %v5376_v39  ;;  %4441 = vmatprep.mubr.msk.f32.mxu0 %vm295_vm1, %v5379_v40 }
  0x46   : > { %4270 = vmatmul.mubr.msk.f32.gmra.mrb[16].mxu1 %vm295_vm1, %v5392_v41  ;;  %4442 = vmatmul.mubr.msk.f32.gmra.mrb[4].mxu0 %vm295_vm1, %v5395_v42 }
  0x47   : > { %4272 = vmatprep.mubr.msk.f32.mxu1 %vm295_vm1, %v5398_v43  ;;  %4444 = vmatprep.mubr.msk.f32.mxu0 %vm295_vm1, %v5401_v44 }
  0x4a   : > { %4273 = vmatmul.mubr.msk.f32.gmra.mrb[18].mxu1 %vm295_vm1, %v5412_v45  ;;  %4445 = vmatmul.mubr.msk.f32.gmra.mrb[6].mxu0 %vm295_vm1, %v5415_v46 }
  0x4b   : > { %4275 = vmatprep.mubr.msk.f32.mxu1 %vm295_vm1, %v5418_v47  ;;  %4447 = vmatprep.mubr.msk.f32.mxu0 %vm295_vm1, %v5421_v48 }
  0x4e   : > { %4276 = vmatmul.mubr.msk.f32.gmra.mrb[20].mxu1 %vm295_vm1, %v5432_v49  ;;  %4448 = vmatmul.mubr.msk.f32.gmra.mrb[8].mxu0 %vm295_vm1, %v5435_v50 }
  0x4f   : > { %4278 = vmatprep.mubr.msk.f32.mxu1 %vm295_vm1, %v5438_v51  ;;  %4450 = vmatprep.mubr.msk.f32.mxu0 %vm295_vm1, %v5441_v52 }
  0x52   : > { %4279 = vmatmul.mubr.msk.f32.gmra.mrb[22].mxu1 %vm295_vm1, %v5452_v53  ;;  %4451 = vmatmul.mubr.msk.f32.gmra.mrb[10].mxu0 %vm295_vm1, %v5455_v54 }
  0x53   : > { %4283 = vmatprep.mubr.msk.f32.mxu1 %vm295_vm1, %v244_v55  ;;  %4453 = vmatprep.mubr.msk.f32.mxu0 %vm295_vm1, %v5459_v56  ;;  %v5604_v55 = vld [vmem:[%s5207_s13 + $0x98] sm:$0xff] }
  0x56   : > { %4284 = vmatmul.mubr.msk.f32.vlgmr.msra.gmra.mrb[0].mxu1 %vm295_vm1, %v245_v57  ;;  %4454 = vmatmul.mubr.msk.f32.gmra.mrb[12].mxu0 %vm295_vm1, %v5470_v58  ;;  %v5607_v57 = vld [vmem:[%s5207_s13 + $0xa0] sm:$0xff] }
  0x57   : > { %4320 = vmatpush3.msk.msra.mxu1 %vm368_vm0, %v5233_v11  ;;  %4286 = vmatprep.mubr.msk.f32.mxu1 %vm295_vm1, %v246_v59  ;;  %v5590_v11 = vld [vmem:[%s5207_s13 + $0x88] sm:$0xff] }
  0x58   : > { %4456 = vmatprep.mubr.msk.f32.mxu0 %vm295_vm1, %v5474_v60  ;;  %4357 = vmatprep.subr.msk.mxu1 %vm368_vm0, %v5479_v61  ;;  %v5618_v59 = vld [vmem:[%s5207_s13 + $0xa8] sm:$0xff] }
  0x5a   : > { %4287 = vmatmul.mubr.msk.f32.gmra.mrb[2].mxu1 %vm295_vm1, %v5211_v5  ;;  %4457 = vmatmul.mubr.msk.f32.gmra.mrb[14].mxu0 %vm295_vm1, %v5488_v62  ;;  %v5534_v5 = vld [vmem:[%s5207_s13 + $0xc2] sm:$0xff] }
  0x5b   : > { %4289 = vmatprep.mubr.msk.f32.mxu1 %vm295_vm1, %v5218_v7  ;;  %4459 = vmatprep.mubr.msk.f32.mxu0 %vm295_vm1, %v5493_v63  ;;  %6864 = vst [vmem:[#allocation11_spill] sm:$0xff] %v5534_v5  ;;  %v5548_v7 = vld [vmem:[%s5207_s13 + $0xd2] sm:$0xff] }
  0x5c   : > { %6866 = vst [vmem:[#allocation13_spill] sm:$0xff] %v5548_v7 }
  0x5e   : > { %4290 = vmatmul.mubr.msk.f32.gmra.mrb[4].mxu1 %vm295_vm1, %v5222_v9  ;;  %4460 = vmatmul.mubr.msk.f32.gmra.mrb[16].mxu0 %vm295_vm1, %v5506_v0  ;;  %v5572_v9 = vld [vmem:[%s5207_s13 + $0x78] sm:$0xff] }
  0x5f   : > { %4292 = vmatprep.mubr.msk.f32.mxu1 %vm295_vm1, %v5241_v13  ;;  %4462 = vmatprep.mubr.msk.f32.mxu0 %vm295_vm1, %v5509_v2 }
  0x62   : > { %4293 = vmatmul.mubr.msk.f32.gmra.mrb[6].mxu1 %vm295_vm1, %v5250_v15  ;;  %4463 = vmatmul.mubr.msk.f32.gmra.mrb[18].mxu0 %vm295_vm1, %v5520_v3 }
  0x63   : > { %4295 = vmatprep.mubr.msk.f32.mxu1 %vm295_vm1, %v5267_v17  ;;  %4465 = vmatprep.mubr.msk.f32.mxu0 %vm295_vm1, %v5523_v4 }
  0x66   : > { %4296 = vmatmul.mubr.msk.f32.gmra.mrb[8].mxu1 %vm295_vm1, %v5273_v19  ;;  %4466 = vmatmul.mubr.msk.f32.gmra.mrb[20].mxu0 %vm295_vm1, %v5534_v5  ;;  %v817_v5 = vld [vmem:[%s5207_s13 + $0x2] sm:$0xff] }
  0x67   : > { %4298 = vmatprep.mubr.msk.f32.mxu1 %vm295_vm1, %v5287_v21  ;;  %4468 = vmatprep.mubr.msk.f32.mxu0 %vm295_vm1, %v5537_v6  ;;  %v5632_v6 = vld [vmem:[%s5207_s13 + $0xb8] sm:$0xff] }
  0x6a   : > { %4299 = vmatmul.mubr.msk.f32.gmra.mrb[10].mxu1 %vm295_vm1, %v5293_v23  ;;  %4469 = vmatmul.mubr.msk.f32.gmra.mrb[22].mxu0 %vm295_vm1, %v5548_v7  ;;  %v5621_v7 = vld [vmem:[%s5207_s13 + $0xb0] sm:$0xff] }
  0x6b   : > { %4301 = vmatprep.mubr.msk.f32.mxu1 %vm295_vm1, %v5307_v25  ;;  %4473 = vmatprep.mubr.msk.f32.mxu0 %vm295_vm1, %v5270_v18 }
  0x6e   : > { %4302 = vmatmul.mubr.msk.f32.gmra.mrb[12].mxu1 %vm295_vm1, %v5313_v27  ;;  %4474 = vmatmul.mubr.msk.f32.vlgmr.msra.gmra.mrb[0].mxu0 %vm295_vm1, %v5284_v20 }
  0x6f   : > { %4510 = vmatpush3.msk.msra.mxu0 %vm368_vm0, %v5358_v36  ;;  %4304 = vmatprep.mubr.msk.f32.mxu1 %vm295_vm1, %v5327_v29  ;;  %v5593_v36 = vld [vmem:[%s5207_s13 + $0x90] sm:$0xff] }
  0x70   : > { %4476 = vmatprep.mubr.msk.f32.mxu0 %vm295_vm1, %v5290_v22  ;;  %4547 = vmatprep.subr.msk.mxu0 %vm368_vm0, %v5561_v8 }
  0x72   : > { %4305 = vmatmul.mubr.msk.f32.gmra.mrb[14].mxu1 %vm295_vm1, %v5572_v9  ;;  %4477 = vmatmul.mubr.msk.f32.gmra.mrb[2].mxu0 %vm295_vm1, %v5304_v24 }
  0x73   : > { %4307 = vmatprep.mubr.msk.f32.mxu1 %vm295_vm1, %v5577_v10  ;;  %4479 = vmatprep.mubr.msk.f32.mxu0 %vm295_vm1, %v5310_v26 }
  0x76   : > { %4308 = vmatmul.mubr.msk.f32.gmra.mrb[16].mxu1 %vm295_vm1, %v5590_v11  ;;  %4480 = vmatmul.mubr.msk.f32.gmra.mrb[4].mxu0 %vm295_vm1, %v5324_v28 }
  0x77   : > { %4310 = vmatprep.mubr.msk.f32.mxu1 %vm295_vm1, %v5593_v36  ;;  %4482 = vmatprep.mubr.msk.f32.mxu0 %vm295_vm1, %v5330_v30 }
  0x7a   : > { %4311 = vmatmul.mubr.msk.f32.gmra.mrb[18].mxu1 %vm295_vm1, %v5604_v55  ;;  %4483 = vmatmul.mubr.msk.f32.gmra.mrb[6].mxu0 %vm295_vm1, %v5344_v32 }
  0x7b   : > { %4313 = vmatprep.mubr.msk.f32.mxu1 %vm295_vm1, %v5607_v57  ;;  %4485 = vmatprep.mubr.msk.f32.mxu0 %vm295_vm1, %v5350_v34  ;;  %v819_v34 = vld [vmem:[%s5207_s13 + $0x12] sm:$0xff] }
  0x7e   : > { %4314 = vmatmul.mubr.msk.f32.gmra.mrb[20].mxu1 %vm295_vm1, %v5618_v59  ;;  %4486 = vmatmul.mubr.msk.f32.gmra.mrb[8].mxu0 %vm295_vm1, %v5368_v37  ;;  %v818_v37 = vld [vmem:[%s5207_s13 + $0xa] sm:$0xff] }
  0x7f   : > { %4316 = vmatprep.mubr.msk.f32.mxu1 %vm295_vm1, %v5621_v7  ;;  %4488 = vmatprep.mubr.msk.f32.mxu0 %vm295_vm1, %v5376_v39 }
  0x82   : > { %4317 = vmatmul.mubr.msk.f32.gmra.mrb[22].mxu1 %vm295_vm1, %v5632_v6  ;;  %4489 = vmatmul.mubr.msk.f32.gmra.mrb[10].mxu0 %vm295_vm1, %v5392_v41 }
  0x83   : > { %4321 = vmatprep.mubr.msk.f32.mxu1 %vm295_vm1, %v817_v5  ;;  %4491 = vmatprep.mubr.msk.f32.mxu0 %vm295_vm1, %v5398_v43 }
  0x86   : > { %4322 = vmatmul.mubr.msk.f32.vlgmr.msra.gmra.mrb[0].mxu1 %vm295_vm1, %v818_v37  ;;  %4492 = vmatmul.mubr.msk.f32.gmra.mrb[12].mxu0 %vm295_vm1, %v5412_v45  ;;  %v2081_v37 = vld [vmem:[%s5207_s13 + $0xe1] sm:$0xff] }
  0x87   : > { %4358 = vmatpush3.msk.msra.mxu1 %vm368_vm0, %v5479_v61  ;;  %4324 = vmatprep.mubr.msk.f32.mxu1 %vm295_vm1, %v819_v34  ;;  %v5663_v34 = vld [vmem:[%s5207_s13 + $0xc1] sm:$0xff]  ;;  %v2082_v61 = vld [vmem:[%s5207_s13 + $0xe9] sm:$0xff] }
  0x88   : > { %4494 = vmatprep.mubr.msk.f32.mxu0 %vm295_vm1, %v5418_v47  ;;  %4585 = vmatprep.subr.msk.mxu1 %vm368_vm0, %v5184_v1 }
  0x8a   : > { %4325 = vmatmul.mubr.msk.f32.gmra.mrb[2].mxu1 %vm295_vm1, %v5333_v31  ;;  %4495 = vmatmul.mubr.msk.f32.gmra.mrb[14].mxu0 %vm295_vm1, %v5432_v49  ;;  %v5674_v31 = vld [vmem:[%s5207_s13 + $0xc9] sm:$0xff] }
  0x8b   : > { %4327 = vmatprep.mubr.msk.f32.mxu1 %vm295_vm1, %v5347_v33  ;;  %4497 = vmatprep.mubr.msk.f32.mxu0 %vm295_vm1, %v5438_v51  ;;  %v5677_v33 = vld [vmem:[%s5207_s13 + $0xd1] sm:$0xff] }
  0x8e   : > { %4328 = vmatmul.mubr.msk.f32.gmra.mrb[4].mxu1 %vm295_vm1, %v5353_v35  ;;  %4498 = vmatmul.mubr.msk.f32.gmra.mrb[16].mxu0 %vm295_vm1, %v5452_v53  ;;  %v2080_v35 = vld [vmem:[%s5207_s13 + $0xd9] sm:$0xff] }
  0x8f   : > { %4330 = vmatprep.mubr.msk.f32.mxu1 %vm295_vm1, %v5371_v38  ;;  %4500 = vmatprep.mubr.msk.f32.mxu0 %vm295_vm1, %v5663_v34 }
  0x92   : > { %4331 = vmatmul.mubr.msk.f32.gmra.mrb[6].mxu1 %vm295_vm1, %v5379_v40  ;;  %4501 = vmatmul.mubr.msk.f32.gmra.mrb[18].mxu0 %vm295_vm1, %v5674_v31 }
  0x93   : > { %4333 = vmatprep.mubr.msk.f32.mxu1 %vm295_vm1, %v5395_v42  ;;  %4503 = vmatprep.mubr.msk.f32.mxu0 %vm295_vm1, %v5677_v33 }
  0x96   : > { %4334 = vmatmul.mubr.msk.f32.gmra.mrb[8].mxu1 %vm295_vm1, %v5401_v44  ;;  %4504 = vmatmul.mubr.msk.f32.gmra.mrb[20].mxu0 %vm295_vm1, %v2080_v35 }
  0x97   : > { %4336 = vmatprep.mubr.msk.f32.mxu1 %vm295_vm1, %v5415_v46  ;;  %4506 = vmatprep.mubr.msk.f32.mxu0 %vm295_vm1, %v2081_v37 }
  0x9a   : > { %4337 = vmatmul.mubr.msk.f32.gmra.mrb[10].mxu1 %vm295_vm1, %v5421_v48  ;;  %4507 = vmatmul.mubr.msk.f32.gmra.mrb[22].mxu0 %vm295_vm1, %v2082_v61 }
  0x9b   : > { %4339 = vmatprep.mubr.msk.f32.mxu1 %vm295_vm1, %v5435_v50  ;;  %4511 = vmatprep.mubr.msk.f32.mxu0 %vm295_vm1, %v5241_v13  ;;  %v5784_v13 = vld [vmem:[%s5207_s13 + $0xd0] sm:$0xff] }
  0x9e   : > { %4340 = vmatmul.mubr.msk.f32.gmra.mrb[12].mxu1 %vm295_vm1, %v5441_v52  ;;  %4512 = vmatmul.mubr.msk.f32.vlgmr.msra.gmra.mrb[0].mxu0 %vm295_vm1, %v5250_v15  ;;  %v2055_v15 = vld [vmem:[%s5207_s13 + $0xe0] sm:$0xff] }
  0x9f   : > { %4548 = vmatpush3.msk.msra.mxu0 %vm368_vm0, %v5561_v8  ;;  %4342 = vmatprep.mubr.msk.f32.mxu1 %vm295_vm1, %v5455_v54 }
  0xa0   : > { %4514 = vmatprep.mubr.msk.f32.mxu0 %vm295_vm1, %v5267_v17  ;;  %v6867_v17 = vld [vmem:[#allocation9_spill] sm:$0xff] }
  0xa2   : > { %4343 = vmatmul.mubr.msk.f32.gmra.mrb[14].mxu1 %vm295_vm1, %v5459_v56  ;;  %4515 = vmatmul.mubr.msk.f32.gmra.mrb[2].mxu0 %vm295_vm1, %v5273_v19  ;;  %v6869_v19 = vld [vmem:[#allocation11_spill] sm:$0xff] }
  0xa3   : > { %4345 = vmatprep.mubr.msk.f32.mxu1 %vm295_vm1, %v5470_v58  ;;  %4517 = vmatprep.mubr.msk.f32.mxu0 %vm295_vm1, %v5287_v21  ;;  %v6871_v21 = vld [vmem:[#allocation13_spill] sm:$0xff] }
  0xa6   : > { %4346 = vmatmul.mubr.msk.f32.gmra.mrb[16].mxu1 %vm295_vm1, %v5474_v60  ;;  %4518 = vmatmul.mubr.msk.f32.gmra.mrb[4].mxu0 %vm295_vm1, %v5293_v23  ;;  %v2627_v23 = vld [vmem:[%s5207_s13 + $0xe2] sm:$0xff] }
  0xa7   : > { %4348 = vmatprep.mubr.msk.f32.mxu1 %vm295_vm1, %v5488_v62  ;;  %4520 = vmatprep.mubr.msk.f32.mxu0 %vm295_vm1, %v5307_v25  ;;  %v2939_v25 = vlaneseq }
  0xaa   : > { %4349 = vmatmul.mubr.msk.f32.gmra.mrb[18].mxu1 %vm295_vm1, %v5493_v63  ;;  %4521 = vmatmul.mubr.msk.f32.gmra.mrb[6].mxu0 %vm295_vm1, %v5313_v27 }
  0xab   : > { %4351 = vmatprep.mubr.msk.f32.mxu1 %vm295_vm1, %v5506_v0  ;;  %4523 = vmatprep.mubr.msk.f32.mxu0 %vm295_vm1, %v5327_v29 }
  0xae   : > { %4352 = vmatmul.mubr.msk.f32.gmra.mrb[20].mxu1 %vm295_vm1, %v5509_v2  ;;  %4524 = vmatmul.mubr.msk.f32.gmra.mrb[8].mxu0 %vm295_vm1, %v5572_v9 }
  0xaf   : > { %4354 = vmatprep.mubr.msk.f32.mxu1 %vm295_vm1, %v5520_v3  ;;  %4526 = vmatprep.mubr.msk.f32.mxu0 %vm295_vm1, %v5577_v10 }
  0xb2   : > { %4355 = vmatmul.mubr.msk.f32.gmra.mrb[22].mxu1 %vm295_vm1, %v5523_v4  ;;  %4527 = vmatmul.mubr.msk.f32.gmra.mrb[10].mxu0 %vm295_vm1, %v5590_v11 }
  0xb3   : > { %4359 = vmatprep.mubr.msk.f32.mxu1 %vm295_vm1, %v5238_v12  ;;  %4529 = vmatprep.mubr.msk.f32.mxu0 %vm295_vm1, %v5593_v36  ;;  %v2052_v12 = vld [vmem:[%s5207_s13 + $0xc8] sm:$0xff] }
  0xb6   : > { %4360 = vmatmul.mubr.msk.f32.vlgmr.msra.gmra.mrb[0].mxu1 %vm295_vm1, %v5247_v14  ;;  %4530 = vmatmul.mubr.msk.f32.gmra.mrb[12].mxu0 %vm295_vm1, %v5604_v55  ;;  %v2054_v14 = vld [vmem:[%s5207_s13 + $0xd8] sm:$0xff] }
  0xb7   : > { %4586 = vmatpush3.msk.msra.mxu1 %vm368_vm0, %v5184_v1  ;;  %4362 = vmatprep.mubr.msk.f32.mxu1 %vm295_vm1, %v5264_v16  ;;  %v5772_v1 = vld [vmem:[%s5207_s13 + $0xc0] sm:$0xff]  ;;  %v2056_v16 = vld [vmem:[%s5207_s13 + $0xe8] sm:$0xff] }
  0xb8   : > { %4532 = vmatprep.mubr.msk.f32.mxu0 %vm295_vm1, %v5607_v57 }
  0xba   : > { %4363 = vmatmul.mubr.msk.f32.gmra.mrb[2].mxu1 %vm295_vm1, %v5270_v18  ;;  %4533 = vmatmul.mubr.msk.f32.gmra.mrb[14].mxu0 %vm295_vm1, %v5618_v59  ;;  %v6868_v18 = vld [vmem:[#allocation10_spill] sm:$0xff] }
  0xbb   : > { %4365 = vmatprep.mubr.msk.f32.mxu1 %vm295_vm1, %v5284_v20  ;;  %4535 = vmatprep.mubr.msk.f32.mxu0 %vm295_vm1, %v5621_v7  ;;  %v6870_v20 = vld [vmem:[#allocation12_spill] sm:$0xff] }
  0xbe   : > { %4366 = vmatmul.mubr.msk.f32.gmra.mrb[4].mxu1 %vm295_vm1, %v5290_v22  ;;  %4536 = vmatmul.mubr.msk.f32.gmra.mrb[16].mxu0 %vm295_vm1, %v5632_v6  ;;  %v2626_v22 = vld [vmem:[%s5207_s13 + $0xda] sm:$0xff] }
  0xbf   : > { %4368 = vmatprep.mubr.msk.f32.mxu1 %vm295_vm1, %v5304_v24  ;;  %4538 = vmatprep.mubr.msk.f32.mxu0 %vm295_vm1, %v5772_v1  ;;  %v2628_v24 = vld [vmem:[%s5207_s13 + $0xea] sm:$0xff]  ;;  %s6311_s13 = sand.u32 1, %s5046_s16  }
  0xc0   : > { %s4779_s14 = smul.u32 192, %s6311_s13 }
  0xc2   : > { %4369 = vmatmul.mubr.msk.f32.gmra.mrb[6].mxu1 %vm295_vm1, %v5310_v26  ;;  %4539 = vmatmul.mubr.msk.f32.gmra.mrb[18].mxu0 %vm295_vm1, %v2052_v12  ;;  %v5900_v26 = vshrl.u32 %v2939_v25, 7  ;;  %s6450_s27 = scalar_lea.vmem [#allocation2], %s4779_s14  ;;  %s3553_s14 = scalar_lea.sflag [#allocation3], %s6311_s13 }
  0xc3   : > { %4371 = vmatprep.mubr.msk.f32.mxu1 %vm295_vm1, %v5324_v28  ;;  %4541 = vmatprep.mubr.msk.f32.mxu0 %vm295_vm1, %v5784_v13  ;;  %s3576_s9 = sshll.u32 %s6450_s27, 4  ;;  %s6717_s9 = int_to_ptr.vmem [resolvable:$true] %s3576_s9 }
  0xc4   : > { %v2941_v27 = vadd.s32 8, %v5900_v26  ;;  %v5964_v35 = vadd.s32 88, %v5900_v26  ;;  %s4916_s30 = scalar_lea.vmem %s6717_s9, 3072  ;;  %p4923_p4 = scmp.lt.s32.totalorder %s6717_s9, %s4921_s6 }
  0xc5   : > { %p4917_p0 = scmp.ne.s32.totalorder %s6717_s9, %s4916_s30  ;;  %p4924_p5 = scmp.lt.s32.totalorder %s4922_s8, %s4916_s30 }
  0xc6   : > { %4372 = vmatmul.mubr.msk.f32.gmra.mrb[8].mxu1 %vm295_vm1, %v5330_v30  ;;  %4542 = vmatmul.mubr.msk.f32.gmra.mrb[20].mxu0 %vm295_vm1, %v2054_v14  ;;  %v5903_v28 = vmul.u32.u64.low 2863311531, %v2941_v27  ;;  %v5904_v29 = vmul.u32.u64.high 2863311531, %v2941_v27, %v5903_v28  ;;  %v2943_v30 = vadd.s32 24, %v5900_v26 }
  0xc7   : > { %4374 = vmatprep.mubr.msk.f32.mxu1 %vm295_vm1, %v5344_v32  ;;  %4544 = vmatprep.mubr.msk.f32.mxu0 %vm295_vm1, %v2055_v15  ;;  %v2942_v32 = vadd.s32 16, %v5900_v26  ;;  %p4918_p1 = pnand %p4917_p0, %p5156_p3  ;;  %p4925_p6 = por %p4924_p5, %p4923_p4 }
  0xc9   : > { %p4919_p2 = pneg %p4918_p1 }
  0xca   : > { %4375 = vmatmul.mubr.msk.f32.gmra.mrb[10].mxu1 %vm295_vm1, %v6867_v17  ;;  %4545 = vmatmul.mubr.msk.f32.gmra.mrb[22].mxu0 %vm295_vm1, %v2056_v16 }
  0xcb   : > { %4377 = vmatprep.mubr.msk.f32.mxu1 %vm295_vm1, %v6868_v18  ;;  %4549 = vmatprep.mubr.msk.f32.mxu0 %vm295_vm1, %v5371_v38  ;;  %p4926_p7 = pnand %p4925_p6, %p4919_p2 }
  0xce   : > { %4378 = vmatmul.mubr.msk.f32.gmra.mrb[12].mxu1 %vm295_vm1, %v5376_v39  ;;  %4550 = vmatmul.mubr.msk.f32.vlgmr.msra.gmra.mrb[0].mxu0 %vm295_vm1, %v5379_v40  ;;  %v5909_v38 = vmul.u32.u64.low 2863311531, %v5900_v26  ;;  %v5910_v39 = vmul.u32.u64.high 2863311531, %v5900_v26, %v5909_v38 }
  0xcf   : > { %4380 = vmatprep.mubr.msk.f32.mxu1 %vm295_vm1, %v5392_v41  ;;  %4552 = vmatprep.mubr.msk.f32.mxu0 %vm295_vm1, %v5395_v42  ;;  %v5912_v40 = vmul.u32.u64.low 2863311531, %v2943_v30  ;;  %v5913_v41 = vmul.u32.u64.high 2863311531, %v2943_v30, %v5912_v40  ;;  %v2981_v42 = vshrl.u32 %v5904_v29, 4  ;;  %v6009_v38 = vadd.s32 96, %v5900_v26 }
  0xd2   : > { %4381 = vmatmul.mubr.msk.f32.gmra.mrb[14].mxu1 %vm295_vm1, %v5398_v43  ;;  %4553 = vmatmul.mubr.msk.f32.gmra.mrb[2].mxu0 %vm295_vm1, %v5401_v44  ;;  %v5916_v43 = vmul.u32.u64.low 2863311531, %v2942_v32  ;;  %v5917_v44 = vmul.u32.u64.high 2863311531, %v2942_v32, %v5916_v43 }
  0xd3   : > { %4383 = vmatprep.mubr.msk.f32.mxu1 %vm295_vm1, %v5412_v45  ;;  %4555 = vmatprep.mubr.msk.f32.mxu0 %vm295_vm1, %v5415_v46  ;;  %v2945_v45 = vadd.s32 40, %v5900_v26  ;;  %v2982_v46 = vmul.u32 24, %v2981_v42 }
  0xd6   : > { %4384 = vmatmul.mubr.msk.f32.gmra.mrb[16].mxu1 %vm295_vm1, %v5418_v47  ;;  %4556 = vmatmul.mubr.msk.f32.gmra.mrb[4].mxu0 %vm295_vm1, %v5421_v48  ;;  %v2970_v47 = vshrl.u32 %v5910_v39, 4  ;;  %v5072_v39 = vmov 0.0  }
  0xd7   : > { %4386 = vmatprep.mubr.msk.f32.mxu1 %vm295_vm1, %v5432_v49  ;;  %4558 = vmatprep.mubr.msk.f32.mxu0 %vm295_vm1, %v5435_v50  ;;  %v5921_v48 = vmul.u32.u64.low 2863311531, %v2945_v45  ;;  %v5922_v49 = vmul.u32.u64.high 2863311531, %v2945_v45, %v5921_v48  ;;  %v3003_v50 = vshrl.u32 %v5913_v41, 4 }
  0xda   : > { %4387 = vmatmul.mubr.msk.f32.gmra.mrb[18].mxu1 %vm295_vm1, %v5438_v51  ;;  %4559 = vmatmul.mubr.msk.f32.gmra.mrb[6].mxu0 %vm295_vm1, %v5441_v52  ;;  %v2944_v51 = vadd.s32 32, %v5900_v26  ;;  %v2983_v52 = vsub.s32 %v2941_v27, %v2982_v46 }
  0xdb   : > { %4389 = vmatprep.mubr.msk.f32.mxu1 %vm295_vm1, %v5452_v53  ;;  %4561 = vmatprep.mubr.msk.f32.mxu0 %vm295_vm1, %v5455_v54  ;;  %v2992_v53 = vshrl.u32 %v5917_v44, 4  ;;  %v2971_v54 = vmul.u32 24, %v2970_v47 }
  0xdc   : > { %vm3229_vm2 = vcmp.ne.s32.totalorder %v2983_v52, 0  ;;  %vm3253_vm3 = vcmp.lt.s32.totalorder %v2983_v52, 0 }
  0xdd   : > { %vm5938_vm4 = vmand %vm3253_vm3, %vm3229_vm2 }
  0xde   : > { %4390 = vmatmul.mubr.msk.f32.gmra.mrb[20].mxu1 %vm295_vm1, %v5663_v34  ;;  %4562 = vmatmul.mubr.msk.f32.gmra.mrb[8].mxu0 %vm295_vm1, %v5459_v56  ;;  %v3004_v56 = vmul.u32 24, %v3003_v50 }
  0xdf   : > { %4392 = vmatprep.mubr.msk.f32.mxu1 %vm295_vm1, %v5674_v31  ;;  %4564 = vmatprep.mubr.msk.f32.mxu0 %vm295_vm1, %v5470_v58 }
  0xe2   : > { %4393 = vmatmul.mubr.msk.f32.gmra.mrb[22].mxu1 %vm295_vm1, %v5677_v33  ;;  %4565 = vmatmul.mubr.msk.f32.gmra.mrb[10].mxu0 %vm295_vm1, %v5474_v60  ;;  %v5927_v58 = vmul.u32.u64.low 2863311531, %v2944_v51  ;;  %v5928_v60 = vmul.u32.u64.high 2863311531, %v2944_v51, %v5927_v58  ;;  %v5961_v33 = vadd.s32 64, %v5900_v26 }
  0xe3   : > { %4415 = vmatprep.mubr.msk.f32.mxu1 %vm295_vm1, %v5572_v9  ;;  %4567 = vmatprep.mubr.msk.f32.mxu0 %vm295_vm1, %v5488_v62  ;;  %v5931_v62 = vadd.s32 56, %v5900_v26 }
  0xe4   : > { %v3014_v34 = vshrl.u32 %v5928_v60, 4  ;;  %v6056_v60 = vadd.s32 136, %v5900_v26 }
  0xe6   : > { %4416 = vmatmul.mubr.msk.f32.vlgmr.msra.gmra.mrb[12].mxu1 %vm295_vm1, %v5577_v10  ;;  %4568 = vmatmul.mubr.msk.f32.gmra.mrb[12].mxu0 %vm295_vm1, %v5493_v63  ;;  %v2993_v63 = vmul.u32 24, %v2992_v53 }
  0xe7   : > { %4418 = vmatprep.mubr.msk.f32.mxu1 %vm295_vm1, %v5590_v11  ;;  %4570 = vmatprep.mubr.msk.f32.mxu0 %vm295_vm1, %v5506_v0  ;;  %v2972_v0 = vsub.s32 %v5900_v26, %v2971_v54  ;;  %v6044_v53 = vmul.u32.u64.low 2863311531, %v6009_v38  ;;  %v6045_v54 = vmul.u32.u64.high 2863311531, %v6009_v38, %v6044_v53 }
  0xe8   : > { %v2994_v9 = vsub.s32 %v2942_v32, %v2993_v63  ;;  %v6192_v53 = vadd.s32 152, %v5900_v26 }
  0xe9   : > { %vm3228_vm5 = vcmp.ne.s32.totalorder %v2972_v0, 0  ;;  %vm3252_vm6 = vcmp.lt.s32.totalorder %v2972_v0, 0 }
  0xea   : > { %4419 = vmatmul.mubr.msk.f32.gmra.mrb[14].mxu1 %vm295_vm1, %v5593_v36  ;;  %4571 = vmatmul.mubr.msk.f32.gmra.mrb[14].mxu0 %vm295_vm1, %v5509_v2  ;;  %v5935_v2 = vadd.s32 48, %v5900_v26  ;;  %vm5956_vm9 = vmand %vm3252_vm6, %vm3228_vm5  ;;  %vm3230_vm10 = vcmp.ne.s32.totalorder %v2994_v9, 0  ;;  %vm3254_vm11 = vcmp.lt.s32.totalorder %v2994_v9, 0 }
  0xeb   : > { %4421 = vmatprep.mubr.msk.f32.mxu1 %vm295_vm1, %v5604_v55  ;;  %4573 = vmatprep.mubr.msk.f32.mxu0 %vm295_vm1, %v5520_v3  ;;  %v3301_v3 = vadd.s32 24, %v2983_v52  ;;  %vm5983_vm14 = vmand %vm3254_vm11, %vm3230_vm10 }
  0xec   : > { %v5947_v10 = vmul.u32.u64.low 2863311531, %v5935_v2  ;;  %v5948_v11 = vmul.u32.u64.high 2863311531, %v5935_v2, %v5947_v10 }
  0xed   : > { %v3325_v36 = vsel %vm5938_vm4, %v3301_v3, %v2983_v52 }
  0xee   : > { %4422 = vmatmul.mubr.msk.f32.gmra.mrb[16].mxu1 %vm295_vm1, %v5607_v57  ;;  %4574 = vmatmul.mubr.msk.f32.gmra.mrb[16].mxu0 %vm295_vm1, %v5523_v4  ;;  %v3025_v4 = vshrl.u32 %v5922_v49, 4  ;;  %v5953_v57 = vadd.s32 72, %v5900_v26  ;;  %vm5966_vm12 = vcmp.lt.s32.totalorder %v3325_v36, 16  ;;  %v3036_v28 = vshrl.u32 %v5948_v11, 4 }
  0xef   : > { %4424 = vmatprep.mubr.msk.f32.mxu1 %vm295_vm1, %v5618_v59  ;;  %4576 = vmatprep.mubr.msk.f32.mxu0 %vm295_vm1, %v6869_v19  ;;  %v3300_v59 = vadd.s32 24, %v2972_v0  ;;  %v3015_v19 = vmul.u32 24, %v3014_v34  ;;  %v6014_v40 = vsel %vm5966_vm12, 1.0, %v5072_v39  ;;  %v6080_v36 = vadd.s32 128, %v5900_v26 }
  0xf0   : > { %v3026_v55 = vmul.u32 24, %v3025_v4  ;;  %v5978_v15 = vmul.u32.u64.low 2863311531, %v5953_v57  ;;  %v5979_v16 = vmul.u32.u64.high 2863311531, %v5953_v57, %v5978_v15 }
  0xf1   : > { %v3324_v17 = vsel %vm5956_vm9, %v3300_v59, %v2972_v0  ;;  %v6016_v41 = vsub.s32 %v2944_v51, %v3015_v19  ;;  %v3037_v50 = vmul.u32 24, %v3036_v28  ;;  %v6040_v51 = vadd.s32 120, %v5900_v26 }
  0xf2   : > { %4425 = vmatmul.mubr.msk.f32.gmra.mrb[18].mxu1 %vm295_vm1, %v5621_v7  ;;  %4577 = vmatmul.mubr.msk.f32.gmra.mrb[18].mxu0 %vm295_vm1, %v6870_v20  ;;  %v5943_v7 = vmul.u32.u64.low 2863311531, %v5931_v62  ;;  %v5944_v8 = vmul.u32.u64.high 2863311531, %v5931_v62, %v5943_v7  ;;  %v3027_v14 = vsub.s32 %v2945_v45, %v3026_v55  ;;  %v3069_v52 = vshrl.u32 %v5979_v16, 4 }
  0xf3   : > { %4427 = vmatprep.mubr.msk.f32.mxu1 %vm295_vm1, %v5632_v6  ;;  %4579 = vmatprep.mubr.msk.f32.mxu0 %vm295_vm1, %v6871_v21  ;;  %v3005_v6 = vsub.s32 %v2943_v30, %v3004_v56  ;;  %v5989_v21 = vadd.s32 104, %v5900_v26  ;;  %v6048_v56 = vadd.s32 112, %v5900_v26  ;;  %vm3232_vm5 = vcmp.ne.s32.totalorder %v6016_v41, 0 }
  0xf4   : > { %v3047_v20 = vshrl.u32 %v5944_v8, 4  ;;  %vm3233_vm15 = vcmp.ne.s32.totalorder %v3027_v14, 0  ;;  %vm3257_vm0 = vcmp.lt.s32.totalorder %v3027_v14, 0  ;;  %v3305_v44 = vadd.s32 24, %v3027_v14 }
  0xf5   : > { %vm3231_vm7 = vcmp.ne.s32.totalorder %v3005_v6, 0  ;;  %vm3255_vm8 = vcmp.lt.s32.totalorder %v3005_v6, 0  ;;  %v3303_v61 = vadd.s32 24, %v3005_v6  ;;  %vm6035_vm4 = vmand %vm3257_vm0, %vm3233_vm15  ;;  %vm3256_vm6 = vcmp.lt.s32.totalorder %v6016_v41, 0 }
  0xf6   : > { %4428 = vmatmul.mubr.msk.f32.gmra.mrb[20].mxu1 %vm295_vm1, %v5772_v1  ;;  %4580 = vmatmul.mubr.msk.f32.gmra.mrb[20].mxu0 %vm295_vm1, %v2626_v22  ;;  %v5971_v1 = vadd.s32 80, %v5900_v26  ;;  %vm5973_vm13 = vmand %vm3255_vm8, %vm3231_vm7  ;;  %v3048_v42 = vmul.u32 24, %v3047_v20  ;;  %v6023_v45 = vmul.u32.u64.low 2863311531, %v5989_v21  ;;  %v6024_v46 = vmul.u32.u64.high 2863311531, %v5989_v21, %v6023_v45 }
  0xf7   : > { %4430 = vmatprep.mubr.msk.f32.mxu1 %vm295_vm1, %v2052_v12  ;;  %4582 = vmatprep.mubr.msk.f32.mxu0 %vm295_vm1, %v2627_v23  ;;  %v5992_v22 = vmul.u32.u64.low 2863311531, %v5961_v33  ;;  %v5993_v23 = vmul.u32.u64.high 2863311531, %v5961_v33, %v5992_v22  ;;  %v3327_v27 = vsel %vm5973_vm13, %v3303_v61, %v3005_v6  ;;  %v3329_v63 = vsel %vm6035_vm4, %v3305_v44, %v3027_v14  ;;  %vm6071_vm7 = vmand %vm3256_vm6, %vm3232_vm5 }
  0xf8   : > { %v6003_v29 = vmul.u32.u64.low 2863311531, %v5971_v1  ;;  %v6004_v30 = vmul.u32.u64.high 2863311531, %v5971_v1, %v6003_v29  ;;  %vm6026_vm2 = vcmp.lt.s32.totalorder %v3327_v27, 16  ;;  %v6053_v58 = vsub.s32 %v5931_v62, %v3048_v42 }
  0xf9   : > { %v3304_v0 = vadd.s32 24, %v6016_v41  ;;  %v3058_v3 = vshrl.u32 %v5993_v23, 4  ;;  %v6064_v5 = vsub.s32 %v5935_v2, %v3037_v50  ;;  %vm6082_vm8 = vcmp.lt.s32.totalorder %v3329_v63, 16 }
  0xfa   : > { %4431 = vmatmul.mubr.msk.f32.gmra.mrb[22].mxu1 %vm295_vm1, %v5784_v13  ;;  %4583 = vmatmul.mubr.msk.f32.gmra.mrb[22].mxu0 %vm295_vm1, %v2628_v24  ;;  %v3302_v13 = vadd.s32 24, %v2994_v9  ;;  %v5996_v24 = vmul.u32.u64.low 2863311531, %v5964_v35  ;;  %v5997_v25 = vmul.u32.u64.high 2863311531, %v5964_v35, %v5996_v24  ;;  %vm6018_vm1 = vcmp.lt.s32.totalorder %v3324_v17, 16 }
  0xfb   : > { %v3080_v6 = vshrl.u32 %v6004_v30, 4  ;;  %v6068_v62 = vmul.u32.u64.low 2863311531, %v6040_v51  ;;  %v6069_v7 = vmul.u32.u64.high 2863311531, %v6040_v51, %v6068_v62  ;;  %vm3235_vm9 = vcmp.ne.s32.totalorder %v6053_v58, 0 }
  0xfc   : > { %v3326_v32 = vsel %vm5983_vm14, %v3302_v13, %v2994_v9  ;;  %v3091_v4 = vshrl.u32 %v5997_v25, 4  ;;  %v3070_v9 = vmul.u32 24, %v3069_v52  ;;  %vm3259_vm10 = vcmp.lt.s32.totalorder %v6053_v58, 0 }
  0xfd   : > { %vm6030_vm3 = vcmp.lt.s32.totalorder %v3326_v32, 16  ;;  %v6076_v10 = vmul.u32.u64.low 2863311531, %v6048_v56  ;;  %v6077_v11 = vmul.u32.u64.high 2863311531, %v6048_v56, %v6076_v10  ;;  %v3059_v34 = vmul.u32 24, %v3058_v3  ;;  %vm6124_vm13 = vmand %vm3259_vm10, %vm3235_vm9 }
  0xfe   : > { %v6088_v55 = vmul.u32.u64.low 2863311531, %v6056_v60  ;;  %v6089_v59 = vmul.u32.u64.high 2863311531, %v6056_v60, %v6088_v55  ;;  %v3092_v31 = vmul.u32 24, %v3091_v4  ;;  %v3113_v37 = vshrl.u32 %v6024_v46, 4 }
  0xff   : > { %v3328_v12 = vsel %vm6071_vm7, %v3304_v0, %v6016_v41  ;;  %vm3234_vm11 = vcmp.ne.s32.totalorder %v6064_v5, 0  ;;  %vm3258_vm12 = vcmp.lt.s32.totalorder %v6064_v5, 0  ;;  %v3081_v13 = vmul.u32 24, %v3080_v6 }
 0x100   : > { %v6103_v15 = vsub.s32 %v5953_v57, %v3070_v9  ;;  %v3102_v16 = vshrl.u32 %v6045_v54, 4  ;;  %v6107_v17 = vmul.u32.u64.low 2863311531, %v6080_v36  ;;  %v6108_v18 = vmul.u32.u64.high 2863311531, %v6080_v36, %v6107_v17  ;;  %vm6139_vm14 = vmand %vm3258_vm12, %vm3234_vm11 }
 0x101   : > { %v6113_v19 = vsel %vm6018_vm1, 1.0, %v5072_v39  ;;  %v6118_v20 = vsel %vm6026_vm2, 1.0, %v5072_v39  ;;  %v3307_v22 = vadd.s32 24, %v6053_v58  ;;  %v3306_v23 = vadd.s32 24, %v6064_v5 }
 0x102   : > { %v6133_v24 = vsel %vm6030_vm3, 1.0, %v5072_v39  ;;  %v6144_v27 = vsub.s32 %v5961_v33, %v3059_v34  ;;  %v6147_v28 = vsub.s32 %v5964_v35, %v3092_v31  ;;  %v3114_v29 = vmul.u32 24, %v3113_v37 }
 0x103   : > { %v6154_v32 = vsel %vm6082_vm8, 1.0, %v5072_v39  ;;  %vm6156_vm15 = vcmp.lt.s32.totalorder %v3328_v12, 16  ;;  %v6161_v42 = vsub.s32 %v5971_v1, %v3081_v13  ;;  %v3135_v33 = vshrl.u32 %v6069_v7, 4 }
 0x104   : > { %vm3237_vm0 = vcmp.ne.s32.totalorder %v6103_v15, 0  ;;  %vm3261_vm1 = vcmp.lt.s32.totalorder %v6103_v15, 0  ;;  %v3103_v35 = vmul.u32 24, %v3102_v16  ;;  %v3124_v44 = vshrl.u32 %v6077_v11, 4 }
 0x105   : > { %v3331_v45 = vsel %vm6124_vm13, %v3307_v22, %v6053_v58  ;;  %v3330_v1 = vsel %vm6139_vm14, %v3306_v23, %v6064_v5  ;;  %v3309_v46 = vadd.s32 24, %v6103_v15  ;;  %v3157_v47 = vshrl.u32 %v6089_v59, 4  ;;  %vm6185_vm5 = vmand %vm3261_vm1, %vm3237_vm0 }
 0x106   : > { %vm3236_vm2 = vcmp.ne.s32.totalorder %v6144_v27, 0  ;;  %vm3260_vm3 = vcmp.lt.s32.totalorder %v6144_v27, 0  ;;  %vm3239_vm4 = vcmp.ne.s32.totalorder %v6147_v28, 0  ;;  %v6181_v48 = vsub.s32 %v5989_v21, %v3114_v29 }
 0x107   : > { %vm3263_vm6 = vcmp.lt.s32.totalorder %v6147_v28, 0  ;;  %vm3238_vm7 = vcmp.ne.s32.totalorder %v6161_v42, 0  ;;  %v3136_v52 = vmul.u32 24, %v3135_v33  ;;  %vm3262_vm8 = vcmp.lt.s32.totalorder %v6161_v42, 0  ;;  %vm6213_vm11 = vmand %vm3260_vm3, %vm3236_vm2 }
 0x108   : > { %v6198_v21 = vsub.s32 %v6009_v38, %v3103_v35  ;;  %v3125_v58 = vmul.u32 24, %v3124_v44  ;;  %v3146_v63 = vshrl.u32 %v6108_v18, 4  ;;  %vm6201_vm9 = vcmp.lt.s32.totalorder %v3331_v45, 16  ;;  %vm6225_vm12 = vmand %vm3263_vm6, %vm3239_vm4 }
 0x109   : > { %vm6205_vm10 = vcmp.lt.s32.totalorder %v3330_v1, 16  ;;  %v3308_v38 = vadd.s32 24, %v6144_v27  ;;  %v3158_v5 = vmul.u32 24, %v3157_v47  ;;  %v3333_v6 = vsel %vm6185_vm5, %v3309_v46, %v6103_v15  ;;  %vm6238_vm14 = vmand %vm3262_vm8, %vm3238_vm7 }
 0x10a   : > { %v3311_v7 = vadd.s32 24, %v6147_v28  ;;  %v3310_v8 = vadd.s32 24, %v6161_v42  ;;  %vm3241_vm13 = vcmp.ne.s32.totalorder %v6181_v48, 0  ;;  %vm3265_vm0 = vcmp.lt.s32.totalorder %v6181_v48, 0 }
 0x10b   : > { %v6244_v11 = vsub.s32 %v6040_v51, %v3136_v52  ;;  %v6247_v2 = vmul.u32.u64.low 2863311531, %v6192_v53  ;;  %v6248_v55 = vmul.u32.u64.high 2863311531, %v6192_v53, %v6247_v2  ;;  %vm3240_vm1 = vcmp.ne.s32.totalorder %v6198_v21, 0 }
 0x10c   : > { %vm3264_vm2 = vcmp.lt.s32.totalorder %v6198_v21, 0  ;;  %v6255_v34 = vsub.s32 %v6048_v56, %v3125_v58  ;;  %v3147_v31 = vmul.u32 24, %v3146_v63  ;;  %v6260_v37 = vsel %vm6156_vm15, 1.0, %v5072_v39  ;;  %vm6281_vm15 = vmand %vm3265_vm0, %vm3241_vm13 }
 0x10d   : > { %v6265_v51 = vsel %vm6201_vm9, 1.0, %v5072_v39  ;;  %v3332_v12 = vsel %vm6213_vm11, %v3308_v38, %v6144_v27  ;;  %v6271_v13 = vsub.s32 %v6056_v60, %v3158_v5  ;;  %v3335_v56 = vsel %vm6225_vm12, %v3311_v7, %v6147_v28  ;;  %vm6302_vm4 = vmand %vm3264_vm2, %vm3240_vm1 }
 0x10e   : > { %v3334_v15 = vsel %vm6238_vm14, %v3310_v8, %v6161_v42  ;;  %v3313_v17 = vadd.s32 24, %v6181_v48  ;;  %v3312_v18 = vadd.s32 24, %v6198_v21  ;;  %v6292_v57 = vsel %vm6205_vm10, 1.0, %v5072_v39 }
 0x10f   : > { %vm6294_vm3 = vcmp.lt.s32.totalorder %v3333_v6, 16  ;;  %vm3243_vm5 = vcmp.ne.s32.totalorder %v6244_v11, 0  ;;  %vm3267_vm6 = vcmp.lt.s32.totalorder %v6244_v11, 0  ;;  %vm6313_vm7 = vcmp.lt.s32.totalorder %v3332_v12, 16 }
 0x110   : > { %vm3242_vm8 = vcmp.ne.s32.totalorder %v6255_v34, 0  ;;  %vm3266_vm9 = vcmp.lt.s32.totalorder %v6255_v34, 0  ;;  %v6320_v28 = vsub.s32 %v6080_v36, %v3147_v31  ;;  %vm6322_vm10 = vcmp.lt.s32.totalorder %v3335_v56, 16  ;;  %vm6340_vm14 = vmand %vm3267_vm6, %vm3243_vm5 }
 0x111   : > { %vm6326_vm11 = vcmp.lt.s32.totalorder %v3334_v15, 16  ;;  %vm3245_vm12 = vcmp.ne.s32.totalorder %v6271_v13, 0  ;;  %vm3269_vm13 = vcmp.lt.s32.totalorder %v6271_v13, 0  ;;  %v3337_v42 = vsel %vm6281_vm15, %v3313_v17, %v6181_v48  ;;  %vm6358_vm0 = vmand %vm3266_vm9, %vm3242_vm8 }
 0x112   : > { %v3336_v36 = vsel %vm6302_vm4, %v3312_v18, %v6198_v21  ;;  %v3315_v35 = vadd.s32 24, %v6244_v11  ;;  %v6346_v44 = vadd.s32 144, %v5900_v26  ;;  %v6354_v1 = vsel %vm6294_vm3, 1.0, %v5072_v39  ;;  %vm6376_vm1 = vmand %vm3269_vm13, %vm3245_vm12 }
 0x113   : > { %v3314_v47 = vadd.s32 24, %v6255_v34  ;;  %v3317_v48 = vadd.s32 24, %v6271_v13  ;;  %v3179_v50 = vshrl.u32 %v6248_v55, 4  ;;  %v6370_v21 = vsel %vm6313_vm7, 1.0, %v5072_v39 }
 0x114   : > { %vm3244_vm2 = vcmp.ne.s32.totalorder %v6320_v28, 0  ;;  %vm3268_vm15 = vcmp.lt.s32.totalorder %v6320_v28, 0  ;;  %v6383_v63 = vadd.s32 168, %v5900_v26  ;;  %v6388_v0 = vsel %vm6322_vm10, 1.0, %v5072_v39 }
 0x115   : > { %v6393_v3 = vsel %vm6326_vm11, 1.0, %v5072_v39  ;;  %vm6395_vm3 = vcmp.lt.s32.totalorder %v3337_v42, 16  ;;  %vm6399_vm4 = vcmp.lt.s32.totalorder %v3336_v36, 16  ;;  %v3339_v5 = vsel %vm6340_vm14, %v3315_v35, %v6244_v11  ;;  %vm6417_vm5 = vmand %vm3268_vm15, %vm3244_vm2 }
 0x116   : > { %v3316_v6 = vadd.s32 24, %v6320_v28  ;;  %v6408_v62 = vmul.u32.u64.low 2863311531, %v6346_v44  ;;  %v6409_v7 = vmul.u32.u64.high 2863311531, %v6346_v44, %v6408_v62  ;;  %v3338_v10 = vsel %vm6358_vm0, %v3314_v47, %v6255_v34 }
 0x117   : > { %v3341_v2 = vsel %vm6376_vm1, %v3317_v48, %v6271_v13  ;;  %v3180_v11 = vmul.u32 24, %v3179_v50  ;;  %v6422_v31 = vadd.s32 160, %v5900_v26  ;;  %v6430_v34 = vadd.s32 184, %v5900_v26 }
 0x118   : > { %v6426_v15 = vmul.u32.u64.low 2863311531, %v6383_v63  ;;  %v6427_v16 = vmul.u32.u64.high 2863311531, %v6383_v63, %v6426_v15  ;;  %v6436_v17 = vsel %vm6395_vm3, 1.0, %v5072_v39  ;;  %v6441_v18 = vsel %vm6399_vm4, 1.0, %v5072_v39 }
 0x119   : > { %vm6443_vm6 = vcmp.lt.s32.totalorder %v3339_v5, 16  ;;  %vm6453_vm7 = vcmp.lt.s32.totalorder %v3338_v10, 16  ;;  %vm6457_vm8 = vcmp.lt.s32.totalorder %v3341_v2, 16  ;;  %v3340_v27 = vsel %vm6417_vm5, %v3316_v6, %v6320_v28 }
 0x11a   : > { %v6467_v41 = vsub.s32 %v6192_v53, %v3180_v11  ;;  %v6470_v42 = vmul.u32.u64.low 2863311531, %v6422_v31  ;;  %v6471_v36 = vmul.u32.u64.high 2863311531, %v6422_v31, %v6470_v42  ;;  %v6480_v53 = vadd.s32 176, %v5900_v26 }
 0x11b   : > { %v6475_v47 = vmul.u32.u64.low 2863311531, %v6430_v34  ;;  %v6476_v48 = vmul.u32.u64.high 2863311531, %v6430_v34, %v6475_v47  ;;  %v6486_v58 = vsel %vm6443_vm6, 1.0, %v5072_v39  ;;  %v6496_v4 = vsel %vm6457_vm8, 1.0, %v5072_v39 }
 0x11c   : > { %vm6502_vm9 = vcmp.lt.s32.totalorder %v3340_v27, 16  ;;  %vm3247_vm10 = vcmp.ne.s32.totalorder %v6467_v41, 0  ;;  %vm3271_vm11 = vcmp.lt.s32.totalorder %v6467_v41, 0  ;;  %v6512_v55 = vadd.s32 24, %v6467_v41 }
 0x11d   : > { %vm6526_vm12 = vmand %vm3271_vm11, %vm3247_vm10  ;;  %v3190_v27 = vshrl.u32 %v6471_v36, 4 }
 0x189   : > { %v6093_v61 = vpop.f32.mrb[0].mxu1 }
 0x18a   : > { %v6100_v14 = vpop.f32.mrb[1].mxu1 }
 0x18d   : > { %v6149_v30 = vpop.f32.mrb[2].mxu1 }
 0x18e   : > { %v6164_v43 = vpop.f32.mrb[3].mxu1 }
 0x191   : > { %v6183_v49 = vpop.f32.mrb[4].mxu1 }
 0x192   : > { %v6194_v54 = vpop.f32.mrb[5].mxu1 }
 0x195   : > { %v6232_v9 = vpop.f32.mrb[6].mxu1 }
 0x196   : > { %v6250_v59 = vpop.f32.mrb[7].mxu1 }
 0x199   : > { %v6287_v60 = vpop.f32.mrb[8].mxu1 }
 0x19a   : > { %v6308_v25 = vpop.f32.mrb[9].mxu1 }
 0x19d   : > { %v6348_v45 = vpop.f32.mrb[10].mxu1 }
 0x19e   : > { %v6365_v52 = vpop.f32.mrb[11].mxu1 }
 0x1a1   : > { %v4551_v8 = vpop.f32.mrb[0].mxu0 }
 0x1a2   : > { %v4587_v12 = vadd.f32 %v4551_v8, %v6093_v61  ;;  %v2772_v56 = vpop.f32.mrb[1].mxu0 }
 0x1a3   : > { %v4588_v13 = vadd.f32 %v2772_v56, %v6100_v14 }
 0x1a4   : > { %v3421_v22 = vmul.f32 %v4587_v12, %v6014_v40  ;;  %3529 = vst [vmem:[%s6450_s27 + $0x8] sm:$0xff] %v4587_v12 }
 0x1a5   : > { %v3420_v40 = vmul.f32 %v4588_v13, %v6113_v19  ;;  %3528 = vst [vmem:[%s6450_s27] sm:$0xff] %v4588_v13  ;;  %v4554_v29 = vpop.f32.mrb[2].mxu0 }
 0x1a6   : > { %v3475_v33 = vmul.f32 %v4587_v12, %v3421_v22  ;;  %v4589_v35 = vadd.f32 %v4554_v29, %v6149_v30  ;;  %v2782_v46 = vpop.f32.mrb[3].mxu0  ;;  %v6491_v30 = vsel %vm6453_vm7, 1.0, %v5072_v39 }
 0x1a7   : > { %v3444_v28 = vadd.f32 %v3421_v22, %v3420_v40  ;;  %v3474_v19 = vmul.f32 %v4588_v13, %v3420_v40  ;;  %v4590_v50 = vadd.f32 %v2782_v46, %v6164_v43  ;;  %v3168_v43 = vshrl.u32 %v6409_v7, 4 }
 0x1a8   : > { %3531 = vst [vmem:[%s6450_s27 + $0x18] sm:$0xff] %v4589_v35  ;;  %v3423_v38 = vmul.f32 %v4589_v35, %v6118_v20  ;;  %v3201_v7 = vshrl.u32 %v6427_v16, 4  ;;  %v6538_v46 = vsel %vm6502_vm9, 1.0, %v5072_v39 }
 0x1a9   : > { %v3498_v26 = vadd.f32 %v3475_v33, %v3474_v19  ;;  %v3422_v5 = vmul.f32 %v4590_v50, %v6133_v24  ;;  %3530 = vst [vmem:[%s6450_s27 + $0x10] sm:$0xff] %v4590_v50  ;;  %v4557_v6 = vpop.f32.mrb[4].mxu0  ;;  %v3169_v12 = vmul.u32 24, %v3168_v43 }
 0x1aa   : > { %v4591_v8 = vadd.f32 %v4557_v6, %v6183_v49  ;;  %v2792_v10 = vpop.f32.mrb[5].mxu0  ;;  %v6517_v49 = vmul.u32.u64.low 2863311531, %v6480_v53  ;;  %v6518_v56 = vmul.u32.u64.high 2863311531, %v6480_v53, %v6517_v49  ;;  %v3477_v15 = vmul.f32 %v4589_v35, %v3423_v38 }
 0x1ab   : > { %v3445_v2 = vadd.f32 %v3444_v28, %v3422_v5  ;;  %v3476_v20 = vmul.f32 %v4590_v50, %v3422_v5  ;;  %v4592_v24 = vadd.f32 %v2792_v10, %v6194_v54  ;;  %v3202_v23 = vmul.u32 24, %v3201_v7 }
 0x1ac   : > { %v3425_v11 = vmul.f32 %v4591_v8, %v6154_v32  ;;  %3533 = vst [vmem:[%s6450_s27 + $0x28] sm:$0xff] %v4591_v8  ;;  %v6545_v36 = vsub.s32 %v6346_v44, %v3169_v12 }
 0x1ad   : > { %v3499_v13 = vadd.f32 %v3498_v26, %v3476_v20  ;;  %v3424_v16 = vmul.f32 %v4592_v24, %v6260_v37  ;;  %v3446_v61 = vadd.f32 %v3445_v2, %v3423_v38  ;;  %3532 = vst [vmem:[%s6450_s27 + $0x20] sm:$0xff] %v4592_v24  ;;  %v4560_v22 = vpop.f32.mrb[6].mxu0  ;;  %v3223_v37 = vshrl.u32 %v6476_v48, 4 }
 0x1ae   : > { %v4593_v54 = vadd.f32 %v4560_v22, %v6232_v9  ;;  %v2802_v14 = vpop.f32.mrb[7].mxu0  ;;  %v3479_v35 = vmul.f32 %v4591_v8, %v3425_v11  ;;  %v3343_v9 = vsel %vm6526_vm12, %v6512_v55, %v6467_v41  ;;  %v6552_v26 = vsub.s32 %v6383_v63, %v3202_v23 }
 0x1af   : > { %v3447_v40 = vadd.f32 %v3446_v61, %v3424_v16  ;;  %v3478_v29 = vmul.f32 %v4592_v24, %v3424_v16  ;;  %v3500_v42 = vadd.f32 %v3499_v13, %v3477_v15  ;;  %v4594_v33 = vadd.f32 %v2802_v14, %v6250_v59 }
 0x1b0   : > { %3535 = vst [vmem:[%s6450_s27 + $0x38] sm:$0xff] %v4593_v54  ;;  %v3427_v48 = vmul.f32 %v4593_v54, %v6265_v51  ;;  %v3191_v41 = vmul.u32 24, %v3190_v27  ;;  %v3224_v38 = vmul.u32 24, %v3223_v37  ;;  %vm3246_vm13 = vcmp.ne.s32.totalorder %v6545_v36, 0 }
 0x1b1   : > { %v3501_v47 = vadd.f32 %v3500_v42, %v3478_v29  ;;  %v3426_v59 = vmul.f32 %v4594_v33, %v6292_v57  ;;  %v3448_v28 = vadd.f32 %v3447_v40, %v3425_v11  ;;  %3534 = vst [vmem:[%s6450_s27 + $0x30] sm:$0xff] %v4594_v33  ;;  %v4563_v19 = vpop.f32.mrb[8].mxu0  ;;  %vm3270_vm14 = vcmp.lt.s32.totalorder %v6545_v36, 0 }
 0x1b2   : > { %v4595_v50 = vadd.f32 %v4563_v19, %v6287_v60  ;;  %v2812_v43 = vpop.f32.mrb[9].mxu0  ;;  %v3212_v60 = vshrl.u32 %v6518_v56, 4  ;;  %v3481_v57 = vmul.f32 %v4593_v54, %v3427_v48  ;;  %vm3249_vm0 = vcmp.ne.s32.totalorder %v6552_v26, 0  ;;  %vm6573_vm1 = vmand %vm3270_vm14, %vm3246_vm13 }
 0x1b3   : > { %v3449_v44 = vadd.f32 %v3448_v28, %v3426_v59  ;;  %v3480_v5 = vmul.f32 %v4594_v33, %v3426_v59  ;;  %v3502_v6 = vadd.f32 %v3501_v47, %v3479_v35  ;;  %v4596_v62 = vadd.f32 %v2812_v43, %v6308_v25 }
 0x1b4   : > { %v3429_v51 = vmul.f32 %v4595_v50, %v6354_v1  ;;  %3537 = vst [vmem:[%s6450_s27 + $0x48] sm:$0xff] %v4595_v50  ;;  %v3318_v1 = vadd.s32 24, %v6545_v36  ;;  %v6566_v20 = vsub.s32 %v6422_v31, %v3191_v41  ;;  %vm3273_vm2 = vcmp.lt.s32.totalorder %v6552_v26, 0 }
 0x1b5   : > { %v3503_v63 = vadd.f32 %v3502_v6, %v3480_v5  ;;  %v3428_v8 = vmul.f32 %v4596_v62, %v6370_v21  ;;  %v3450_v10 = vadd.f32 %v3449_v44, %v3427_v48  ;;  %3536 = vst [vmem:[%s6450_s27 + $0x40] sm:$0xff] %v4596_v62  ;;  %v4566_v7 = vpop.f32.mrb[10].mxu0  ;;  %v6580_v31 = vadd.s32 24, %v6552_v26  ;;  %vm6609_vm5 = vmand %vm3273_vm2, %vm3249_vm0 }
 0x1b6   : > { %v4597_v2 = vadd.f32 %v4566_v7, %v6348_v45  ;;  %v2822_v25 = vpop.f32.mrb[11].mxu0  ;;  %v3483_v21 = vmul.f32 %v4595_v50, %v3429_v51  ;;  %v3213_v49 = vmul.u32 24, %v3212_v60  ;;  %vm6585_vm15 = vcmp.lt.s32.totalorder %v3343_v9, 16 }
 0x1b7   : > { %v3451_v24 = vadd.f32 %v3450_v10, %v3428_v8  ;;  %v3482_v55 = vmul.f32 %v4596_v62, %v3428_v8  ;;  %v3504_v11 = vadd.f32 %v3503_v63, %v3481_v57  ;;  %v4598_v12 = vadd.f32 %v2822_v25, %v6365_v52 }
 0x1b8   : > { %3539 = vst [vmem:[%s6450_s27 + $0x58] sm:$0xff] %v4597_v2  ;;  %v3431_v15 = vmul.f32 %v4597_v2, %v6388_v0  ;;  %v3342_v23 = vsel %vm6573_vm1, %v3318_v1, %v6545_v36  ;;  %vm3248_vm3 = vcmp.ne.s32.totalorder %v6566_v20, 0  ;;  %v6594_v0 = vsub.s32 %v6430_v34, %v3224_v38 }
 0x1b9   : > { %v3505_v56 = vadd.f32 %v3504_v11, %v3482_v55  ;;  %v3430_v52 = vmul.f32 %v4598_v12, %v6393_v3  ;;  %v3452_v13 = vadd.f32 %v3451_v24, %v3429_v51  ;;  %3538 = vst [vmem:[%s6450_s27 + $0x50] sm:$0xff] %v4598_v12  ;;  %v4417_v16 = vpop.f32.mrb[12].mxu1  ;;  %v4569_v61 = vpop.f32.mrb[12].mxu0  ;;  %vm3272_vm4 = vcmp.lt.s32.totalorder %v6566_v20, 0 }
 0x1ba   : > { %v4599_v32 = vadd.f32 %v4569_v61, %v4417_v16  ;;  %v1640_v54 = vpop.f32.mrb[13].mxu1  ;;  %v2832_v14 = vpop.f32.mrb[13].mxu0  ;;  %v3320_v42 = vadd.s32 24, %v6566_v20  ;;  %v6601_v33 = vsub.s32 %v6480_v53, %v3213_v49  ;;  %v3485_v35 = vmul.f32 %v4597_v2, %v3431_v15  ;;  %vm6623_vm9 = vmand %vm3272_vm4, %vm3248_vm3 }
 0x1bb   : > { %v3453_v3 = vadd.f32 %v3452_v13, %v3430_v52  ;;  %v3484_v27 = vmul.f32 %v4598_v12, %v3430_v52  ;;  %v3506_v37 = vadd.f32 %v3505_v56, %v3483_v21  ;;  %v4600_v40 = vadd.f32 %v2832_v14, %v1640_v54 }
 0x1bc   : > { %v3433_v29 = vmul.f32 %v4599_v32, %v6436_v17  ;;  %3541 = vst [vmem:[%s6450_s27 + $0x68] sm:$0xff] %v4599_v32  ;;  %vm6613_vm6 = vcmp.lt.s32.totalorder %v3342_v23, 16  ;;  %vm3251_vm7 = vcmp.ne.s32.totalorder %v6594_v0, 0  ;;  %vm3275_vm8 = vcmp.lt.s32.totalorder %v6594_v0, 0 }
 0x1bd   : > { %v3507_v9 = vadd.f32 %v3506_v37, %v3484_v27  ;;  %v3432_v36 = vmul.f32 %v4600_v40, %v6441_v18  ;;  %v3454_v34 = vadd.f32 %v3453_v3, %v3431_v15  ;;  %3540 = vst [vmem:[%s6450_s27 + $0x60] sm:$0xff] %v4600_v40  ;;  %v4420_v47 = vpop.f32.mrb[14].mxu1  ;;  %v4572_v48 = vpop.f32.mrb[14].mxu0  ;;  %v3345_v5 = vsel %vm6609_vm5, %v6580_v31, %v6552_v26  ;;  %vm6644_vm12 = vmand %vm3275_vm8, %vm3251_vm7 }
 0x1be   : > { %v4601_v59 = vadd.f32 %v4572_v48, %v4420_v47  ;;  %v1650_v53 = vpop.f32.mrb[15].mxu1  ;;  %v2842_v28 = vpop.f32.mrb[15].mxu0  ;;  %v3487_v44 = vmul.f32 %v4599_v32, %v3433_v29  ;;  %vm3250_vm10 = vcmp.ne.s32.totalorder %v6601_v33, 0  ;;  %vm3274_vm11 = vcmp.lt.s32.totalorder %v6601_v33, 0 }
 0x1bf   : > { %v3455_v18 = vadd.f32 %v3454_v34, %v3432_v36  ;;  %v3486_v50 = vmul.f32 %v4600_v40, %v3432_v36  ;;  %v3508_v43 = vadd.f32 %v3507_v9, %v3485_v35  ;;  %v4602_v41 = vadd.f32 %v2842_v28, %v1650_v53  ;;  %vm6654_vm13 = vmand %vm3274_vm11, %vm3250_vm10 }
 0x1c0   : > { %3543 = vst [vmem:[%s6450_s27 + $0x78] sm:$0xff] %v4601_v59  ;;  %v3435_v62 = vmul.f32 %v4601_v59, %v6486_v58  ;;  %v3344_v26 = vsel %vm6623_vm9, %v3320_v42, %v6566_v20  ;;  %v3322_v2 = vadd.s32 24, %v6601_v33  ;;  %v4006_v12 = vsel %vm6585_vm15, 1.0, %v5072_v39 }
 0x1c1   : > { %v3509_v6 = vadd.f32 %v3508_v43, %v3486_v50  ;;  %v3434_v51 = vmul.f32 %v4602_v41, %v6491_v30  ;;  %v3456_v60 = vadd.f32 %v3455_v18, %v3433_v29  ;;  %3542 = vst [vmem:[%s6450_s27 + $0x70] sm:$0xff] %v4602_v41  ;;  %v4423_v57 = vpop.f32.mrb[16].mxu1  ;;  %v4575_v63 = vpop.f32.mrb[16].mxu0  ;;  %v3323_v30 = vadd.s32 24, %v6594_v0 }
 0x1c2   : > { %v4603_v8 = vadd.f32 %v4575_v63, %v4423_v57  ;;  %v1660_v10 = vpop.f32.mrb[17].mxu1  ;;  %v2852_v7 = vpop.f32.mrb[17].mxu0  ;;  %v4005_v45 = vsel %vm6613_vm6, 1.0, %v5072_v39  ;;  %vm6667_vm14 = vcmp.lt.s32.totalorder %v3345_v5, 16  ;;  %v3489_v31 = vmul.f32 %v4601_v59, %v3435_v62 }
 0x1c3   : > { %v3457_v25 = vadd.f32 %v3456_v60, %v3434_v51  ;;  %v3488_v1 = vmul.f32 %v4602_v41, %v3434_v51  ;;  %v3510_v24 = vadd.f32 %v3509_v6, %v3487_v44  ;;  %v4604_v55 = vadd.f32 %v2852_v7, %v1660_v10 }
 0x1c4   : > { %v3437_v11 = vmul.f32 %v4603_v8, %v6496_v4  ;;  %3545 = vst [vmem:[%s6450_s27 + $0x88] sm:$0xff] %v4603_v8  ;;  %vm6674_vm0 = vcmp.lt.s32.totalorder %v3344_v26, 16  ;;  %v3347_v32 = vsel %vm6644_vm12, %v3323_v30, %v6594_v0  ;;  %v4008_v37 = vsel %vm6667_vm14, 1.0, %v5072_v39 }
 0x1c5   : > { %v3511_v49 = vadd.f32 %v3510_v24, %v3488_v1  ;;  %v3436_v56 = vmul.f32 %v4604_v55, %v6538_v46  ;;  %v3458_v4 = vadd.f32 %v3457_v25, %v3435_v62  ;;  %3544 = vst [vmem:[%s6450_s27 + $0x80] sm:$0xff] %v4604_v55  ;;  %v4426_v15 = vpop.f32.mrb[18].mxu1  ;;  %v4578_v52 = vpop.f32.mrb[18].mxu0  ;;  %v3346_v46 = vsel %vm6654_vm13, %v3322_v2, %v6601_v33 }
 0x1c6   : > { %v4605_v13 = vadd.f32 %v4578_v52, %v4426_v15  ;;  %v1670_v16 = vpop.f32.mrb[19].mxu1  ;;  %v2862_v61 = vpop.f32.mrb[19].mxu0  ;;  %v3491_v27 = vmul.f32 %v4603_v8, %v3437_v11  ;;  %v4007_v47 = vsel %vm6674_vm0, 1.0, %v5072_v39  ;;  %vm6694_vm1 = vcmp.lt.s32.totalorder %v3347_v32, 16 }
 0x1c7   : > { %v3459_v54 = vadd.f32 %v3458_v4, %v3436_v56  ;;  %v3490_v14 = vmul.f32 %v4604_v55, %v3436_v56  ;;  %v3512_v23 = vadd.f32 %v3511_v49, %v3489_v31  ;;  %v4606_v3 = vadd.f32 %v2862_v61, %v1670_v16 }
 0x1c8   : > { %3547 = vst [vmem:[%s6450_s27 + $0x98] sm:$0xff] %v4605_v13  ;;  %v3439_v29 = vmul.f32 %v4605_v13, %v4006_v12  ;;  %vm6698_vm2 = vcmp.lt.s32.totalorder %v3346_v46, 16  ;;  %v4010_v62 = vsel %vm6694_vm1, 1.0, %v5072_v39 }
 0x1c9   : > { %v3513_v40 = vadd.f32 %v3512_v23, %v3490_v14  ;;  %v3438_v0 = vmul.f32 %v4606_v3, %v4005_v45  ;;  %v3460_v42 = vadd.f32 %v3459_v54, %v3437_v11  ;;  %3546 = vst [vmem:[%s6450_s27 + $0x90] sm:$0xff] %v4606_v3  ;;  %v4429_v33 = vpop.f32.mrb[20].mxu1  ;;  %v4581_v35 = vpop.f32.mrb[20].mxu0  ;;  %v4009_v57 = vsel %vm6698_vm2, 1.0, %v5072_v39 }
 0x1ca   : > { %v4607_v9 = vadd.f32 %v4581_v35, %v4429_v33  ;;  %v1680_v36 = vpop.f32.mrb[21].mxu1  ;;  %v2872_v34 = vpop.f32.mrb[21].mxu0  ;;  %v3493_v50 = vmul.f32 %v4605_v13, %v3439_v29 }
 0x1cb   : > { %v3461_v59 = vadd.f32 %v3460_v42, %v3438_v0  ;;  %v3492_v53 = vmul.f32 %v4606_v3, %v3438_v0  ;;  %v3514_v28 = vadd.f32 %v3513_v40, %v3491_v27  ;;  %v4608_v19 = vadd.f32 %v2872_v34, %v1680_v36 }
 0x1cc   : > { %v3441_v18 = vmul.f32 %v4607_v9, %v4008_v37  ;;  %3549 = vst [vmem:[%s6450_s27 + $0xa8] sm:$0xff] %v4607_v9 }
 0x1cd   : > { %v3515_v43 = vadd.f32 %v3514_v28, %v3492_v53  ;;  %v3440_v41 = vmul.f32 %v4608_v19, %v4007_v47  ;;  %v3462_v38 = vadd.f32 %v3461_v59, %v3439_v29  ;;  %3548 = vst [vmem:[%s6450_s27 + $0xa0] sm:$0xff] %v4608_v19  ;;  %v4432_v44 = vpop.f32.mrb[22].mxu1  ;;  %v4584_v5 = vpop.f32.mrb[22].mxu0 }
 0x1ce   : > { %v4609_v6 = vadd.f32 %v4584_v5, %v4432_v44  ;;  %v1690_v51 = vpop.f32.mrb[23].mxu1  ;;  %v2882_v60 = vpop.f32.mrb[23].mxu0  ;;  %v3495_v26 = vmul.f32 %v4607_v9, %v3441_v18 }
 0x1cf   : > { %v3463_v63 = vadd.f32 %v3462_v38, %v3440_v41  ;;  %v3494_v8 = vmul.f32 %v4608_v19, %v3440_v41  ;;  %v3516_v10 = vadd.f32 %v3515_v43, %v3493_v50  ;;  %v4610_v7 = vadd.f32 %v2882_v60, %v1690_v51 }
 0x1d0   : > { %3551 = vst [vmem:[%s6450_s27 + $0xb8] sm:$0xff] %v4609_v6  ;;  %v3443_v30 = vmul.f32 %v4609_v6, %v4010_v62 }
 0x1d1   : > { %v3517_v58 = vadd.f32 %v3516_v10, %v3494_v8  ;;  %v3442_v39 = vmul.f32 %v4610_v7, %v4009_v57  ;;  %v3464_v2 = vadd.f32 %v3463_v63, %v3441_v18  ;;  %3550 = vst [vmem:[%s6450_s27 + $0xb0] sm:$0xff] %v4610_v7 }
 0x1d2   : > { %4929 = shalt.err (!%p4926_p7)
}
 0x1d3   : > { %s4930_s27 = scalar_lea.hbm %s6715_s12, 3072  ;;  %s4934_s5 = scalar_lea.hbm %s6850_s2, 12288 }
 0x1d4   : > { %p4931_p9 = scmp.ne.s32.totalorder %s6715_s12, %s4930_s27  ;;  %p4935_p12 = scmp.lt.u32.totalorder %s6715_s12, %s6850_s2 }
 0x1d5   : > { %p4936_p13 = scmp.lt.u32.totalorder %s4934_s5, %s4930_s27  ;;  %p4938_p1 = scmp.lt.u32.totalorder %s4930_s27, %s6715_s12 }
 0x1d6   : > { %p4932_p10 = pnand %p4931_p9, %p5156_p3 }
 0x1d7   : > { %p4937_p0 = por %p4936_p13, %p4935_p12 }
 0x1d8   : > { %p4933_p11 = pneg %p4932_p10 }
 0x1d9   : > { %p4939_p2 = por %p4938_p1, %p4937_p0 }
 0x1db   : > { %p4940_p4 = pnand %p4939_p2, %p4933_p11 }
 0x1dd   : > { %4943 = shalt.err (!%p4940_p4)
}
 0x1de   : > { %s5074_s30 = smov 128   ;;  %s5075_s8 = smov 8   ;;  %v3465_v25 = vadd.f32 %v3464_v2, %v3442_v39  ;;  %v3496_v1 = vmul.f32 %v4610_v7, %v3442_v39  ;;  %v3518_v24 = vadd.f32 %v3517_v58, %v3495_v26  ;;  %v3497_v55 = vmul.f32 %v4609_v6, %v3443_v30 }
 0x1df   : > { %4832 = dma.vmem_to_hbm [thread:$0]  (%p5156_p3), %s6717_s9, 3072, %s6715_s12, %s3553_s14, %s5074_s30, %s5074_s30, %s5075_s8  }
 0x1e0   : > { %v3466_v20 = vadd.f32 %v3465_v25, %v3443_v30  ;;  %v3519_v11 = vadd.f32 %v3518_v24, %v3496_v1  ;;  %s4012_s24 = sshll.u32 %s5058_s19, 1  ;;  %s6749_s9 = sand.u32 1, %s3748_s23  }
 0x1e1   : > { %s3590_s27 = sadd.s32 %s5054_s18, %s4012_s24  ;;  %s228_s14 = scalar_lea.vmem [#allocation4], %s6311_s13 }
 0x1e2   : > { %v3467_v12 = vrot.slane %v3466_v20, 4  ;;  %v3520_v45 = vadd.f32 %v3519_v11, %v3497_v55  ;;  %s4013_s12 = sshll.u32 %s3590_s27, 4  ;;  %s3594_s10 = sshll.u32 %s228_s14, 4  ;;  %s6760_s10 = int_to_ptr.vmem [resolvable:$true] %s3594_s10 }
 0x1e3   : > { %s6859_s11 = scalar_lea.vmem [#allocation6], %s6311_s13  ;;  %s6758_s18 = scalar_lea.hbm %s6851_s3, %s4013_s12 }
 0x1e4   : > { %v3521_v21 = vrot.slane %v3520_v45, 4  ;;  %v3468_v31 = vadd.f32 %v3467_v12, %v3466_v20  ;;  %s3609_s19 = sshll.u32 %s6859_s11, 4  ;;  %s6765_s8 = scalar_lea.hbm %s6852_s4, %s4013_s12  ;;  %s6767_s19 = int_to_ptr.vmem [resolvable:$true] %s3609_s19 }
 0x1e5   : > { %s3558_s24 = scalar_lea.sflag [#allocation5], %s6749_s9  ;;  %s4944_s27 = scalar_lea.vmem %s6760_s10, 16 }
 0x1e6   : > { %v3522_v49 = vadd.f32 %v3521_v21, %v3520_v45  ;;  %v3469_v56 = vrot.slane %v3468_v31, 2  ;;  %p4945_p5 = scmp.ne.s32.totalorder %s6760_s10, %s4944_s27  ;;  %s5076_s5 = smov [#allocation4]  }
 0x1e7   : > { %s4948_s6 = sshll.u32 %s5076_s5, 4  ;;  %s4949_s6 = int_to_ptr.vmem [resolvable:$false] %s4948_s6 }
 0x1e8   : > { %v3470_v4 = vadd.f32 %v3469_v56, %v3468_v31  ;;  %v3523_v15 = vrot.slane %v3522_v49, 2  ;;  %p4946_p6 = pnand %p4945_p5, %p5156_p3  ;;  %s4950_s11 = scalar_lea.vmem %s4949_s6, 32 }
 0x1e9   : > { %p4951_p9 = scmp.lt.s32.totalorder %s6760_s10, %s4949_s6  ;;  %p4952_p10 = scmp.lt.s32.totalorder %s4950_s11, %s4944_s27 }
 0x1ea   : > { %v3471_v52 = vrot.slane %v3470_v4, 1  ;;  %v3524_v13 = vadd.f32 %v3523_v15, %v3522_v49  ;;  %p4947_p7 = pneg %p4946_p6 }
 0x1eb   : > { %p4953_p11 = por %p4952_p10, %p4951_p9 }
 0x1ec   : > { %v3472_v16 = vadd.f32 %v3471_v52, %v3470_v4  ;;  %v3525_v61 = vrot.slane %v3524_v13, 1 }
 0x1ed   : > { %p4954_p12 = pnand %p4953_p11, %p4947_p7 }
 0x1ee   : > { %3473 = vst [vmem:[%s228_s14] sm:$0x1] %v3472_v16  ;;  %v3526_v22 = vadd.f32 %v3525_v61, %v3524_v13 }
 0x1ef   : > { %4957 = shalt.err (!%p4954_p12)
}
 0x1f0   : > { %s4958_s12 = scalar_lea.hbm %s6758_s18, 16  ;;  %s4962_s30 = scalar_lea.hbm %s6851_s3, 64 }
 0x1f1   : > { %p4959_p13 = scmp.ne.s32.totalorder %s6758_s18, %s4958_s12  ;;  %p4963_p2 = scmp.lt.u32.totalorder %s6758_s18, %s6851_s3 }
 0x1f2   : > { %p4964_p4 = scmp.lt.u32.totalorder %s4962_s30, %s4958_s12  ;;  %p4966_p6 = scmp.lt.u32.totalorder %s4958_s12, %s6758_s18 }
 0x1f3   : > { %p4960_p0 = pnand %p4959_p13, %p5156_p3 }
 0x1f4   : > { %p4965_p5 = por %p4964_p4, %p4963_p2 }
 0x1f5   : > { %p4961_p1 = pneg %p4960_p0 }
 0x1f6   : > { %p4967_p7 = por %p4966_p6, %p4965_p5 }
 0x1f8   : > { %p4968_p9 = pnand %p4967_p7, %p4961_p1 }
 0x1fa   : > { %4971 = shalt.err (!%p4968_p9)
}
 0x1fb   : > { %4833 = dma.vmem_to_hbm [thread:$0]  (%p5156_p3), %s6760_s10, 16, %s6758_s18, %s3558_s24  }
 0x1fc   : > { %s6968_s11 = scalar_lea.vmem [#allocation6], %s6311_s13  ;;  %s4972_s27 = scalar_lea.vmem %s6767_s19, 16 }
 0x1fd   : > { %3527 = vst [vmem:[%s6968_s11] sm:$0x1] %v3526_v22  ;;  %p4973_p10 = scmp.ne.s32.totalorder %s6767_s19, %s4972_s27  ;;  %s5077_s12 = smov [#allocation6]  }
 0x1fe   : > { %s4976_s14 = sshll.u32 %s5077_s12, 4  ;;  %s4977_s14 = int_to_ptr.vmem [resolvable:$false] %s4976_s14 }
 0x1ff   : > { %p4974_p11 = pnand %p4973_p10, %p5156_p3  ;;  %s4978_s23 = scalar_lea.vmem %s4977_s14, 32 }
 0x200   : > { %p4979_p13 = scmp.lt.s32.totalorder %s6767_s19, %s4977_s14  ;;  %p4980_p0 = scmp.lt.s32.totalorder %s4978_s23, %s4972_s27 }
 0x201   : > { %p4975_p12 = pneg %p4974_p11 }
 0x202   : > { %p4981_p1 = por %p4980_p0, %p4979_p13 }
 0x204   : > { %p4982_p2 = pnand %p4981_p1, %p4975_p12 }
 0x206   : > { %4985 = shalt.err (!%p4982_p2)
}
 0x207   : > { %s4986_s13 = scalar_lea.hbm %s6765_s8, 16  ;;  %s4990_s30 = scalar_lea.hbm %s6852_s4, 64 }
 0x208   : > { %p4987_p4 = scmp.ne.s32.totalorder %s6765_s8, %s4986_s13  ;;  %p4991_p7 = scmp.lt.u32.totalorder %s6765_s8, %s6852_s4 }
 0x209   : > { %p4992_p9 = scmp.lt.u32.totalorder %s4990_s30, %s4986_s13  ;;  %p4994_p11 = scmp.lt.u32.totalorder %s4986_s13, %s6765_s8 }
 0x20a   : > { %p4988_p5 = pnand %p4987_p4, %p5156_p3 }
 0x20b   : > { %p4993_p10 = por %p4992_p9, %p4991_p7 }
 0x20c   : > { %p4989_p6 = pneg %p4988_p5 }
 0x20d   : > { %p4995_p12 = por %p4994_p11, %p4993_p10 }
 0x20f   : > { %p4996_p13 = pnand %p4995_p12, %p4989_p6 }
 0x211   : > { %4999 = shalt.err (!%p4996_p13)
}
 0x212   : > { %4834 = dma.vmem_to_hbm [thread:$0]  (%p5156_p3), %s6767_s19, 16, %s6765_s8, %s3558_s24  }
 0x213 PF: > { %p4848_p0 = scmp.ge.s32.totalorder %s5070_s22, 2  ;;  %s3621_s11 = sand.u32 1, %s5042_s15  }
 0x214   : > { %s3622_s27 = scalar_lea.sflag [#allocation3], %s3621_s11 }
 0x215   : > { %p4839_p1 = pnand %p4848_p0, %p5167_p8 }
 0x217   : > { %5033 = dma.done.wait (!%p4839_p1), %s3622_s27, 3072  }
 0x218   : > { %5035 = vsyncadd (!%p4839_p1), %s3622_s27, 4294964224  ;;  %s6969_s12 = sadd.s32 4294967294, %s5070_s22  }
 0x219   : > { %s3630_s14 = sand.u32 1, %s6969_s12  }
 0x21a   : > { %s3631_s28 = scalar_lea.sflag [#allocation5], %s3630_s14 }
 0x21b   : > { %5037 = dma.done.wait (!%p4839_p1), %s3631_s28, 32  }
 0x21c   : > { %5039 = vsyncadd (!%p4839_p1), %s3631_s28, 4294967264  ;;  %s21_s22 = sadd.s32 1, %s5070_s22   ;;  %s6970_s15 = smov %s5046_s16 }
 0x21d   : > { %p18_p3 = scmp.ge.s32.totalorder %s21_s22, 6   ;;  %s6971_s16 = smov %s5050_s17 }
 0x21e   : > { %s6972_s17 = smov %s5176_s7  ;;  %s6973_s18 = smov %s5062_s20 }
 0x21f   : > { %s6974_s19 = smov %s5066_s21  ;;  %s6975_s20 = smov %s6978_s25 }
 0x220   : > { %s6976_s21 = smov %s6982_s26  ;;  %20 = sbr.rel (!%p18_p3) target bundleno = 7 (0x7), region = 103 }
 0x227   :  { %3643 = vsyncpa [#allocation3], 1 }
 0x228   :  { %3645 = vsyncpa [#allocation3 + $0x1], 1 }
 0x229   :  { %3646 = vsyncpa [#allocation5], 1 }
 0x22a   :  { %3648 = vsyncpa [#allocation5 + $0x1], 1 }

</bundles_post_ra>
